<compile_context>
chip_gen: v5e
topology: v5e:2x2
jax: 0.10.0
libtpu: 0.0.40
codegen_flags: <defaults>
</compile_context>

<pallas_src>
import functools

import jax
import jax.numpy as jnp
from jax.experimental import pallas as pl
from jax.experimental.pallas import tpu as pltpu


def _encoder_kernel(x_ref,
                    ln1_g_ref, ln1_b_ref, wqkv_ref, bqkv_ref, wo_ref, bo_ref,
                    ln2_g_ref, ln2_b_ref, w1_ref, b1_ref, w2_ref, b2_ref,
                    o_ref,
                    *, num_heads, head_dim, eps):
    # One grid step processes Nb batch elements: x block is (Nb, P, C).
    Nb, P, C = x_ref.shape
    R = Nb * P

    x = x_ref[...].reshape(R, C)                       # leading-dim reshape (free)

    # ---- pre-norm MHA branch ----
    mu = jnp.mean(x, axis=-1, keepdims=True)
    var = jnp.mean(jnp.square(x - mu), axis=-1, keepdims=True)
    xn = (x - mu) * jax.lax.rsqrt(var + eps)
    xn = xn * ln1_g_ref[...] + ln1_b_ref[...]          # (1, C) params broadcast

    # qkv projection: weights pre-transposed to (C, 3C), q rows pre-scaled by head_dim**-0.5
    qkv = jnp.dot(xn, wqkv_ref[...], preferred_element_type=jnp.float32) + bqkv_ref[...]
    qkv3 = qkv.reshape(Nb, P, 3 * C)                   # leading-dim reshape (free)

    # Attention: per-head slices (static), each head batched over the Nb block.
    head_outs = []
    for h in range(num_heads):
        lo = h * head_dim
        q = qkv3[:, :, lo:lo + head_dim]                       # (Nb, P, hd), already scaled
        k = qkv3[:, :, C + lo:C + lo + head_dim]               # (Nb, P, hd)
        v = qkv3[:, :, 2 * C + lo:2 * C + lo + head_dim]       # (Nb, P, hd)
        s = jnp.einsum('bqd,bkd->bqk', q, k,
                       preferred_element_type=jnp.float32)     # (Nb, P, P)
        s = s - jnp.max(s, axis=-1, keepdims=True)
        p = jnp.exp(s)
        p = p * pl.reciprocal(jnp.sum(p, axis=-1, keepdims=True), approx=True)
        head_outs.append(jnp.einsum('bqk,bkd->bqd', p, v,
                                    preferred_element_type=jnp.float32))
    attn_out = jnp.concatenate(head_outs, axis=-1).reshape(R, C)

    mha = jnp.dot(attn_out, wo_ref[...], preferred_element_type=jnp.float32) + bo_ref[...]
    y = x + mha                                        # residual 1

    # ---- pre-norm FFN branch ----
    mu2 = jnp.mean(y, axis=-1, keepdims=True)
    var2 = jnp.mean(jnp.square(y - mu2), axis=-1, keepdims=True)
    yn = (y - mu2) * jax.lax.rsqrt(var2 + eps)
    yn = yn * ln2_g_ref[...] + ln2_b_ref[...]

    h1 = jnp.dot(yn, w1_ref[...], preferred_element_type=jnp.float32) + b1_ref[...]
    h1 = h1 * jax.nn.sigmoid(h1)                       # SiLU
    ffn = jnp.dot(h1, w2_ref[...], preferred_element_type=jnp.float32) + b2_ref[...]

    o_ref[...] = (y + ffn).reshape(Nb, P, C)           # residual 2


def _choose_block_batch(N, P):
    # Smallest divisor of N whose row count Nb*P reaches 128 (MXU M fill) -- this also
    # keeps the grid as long as possible so a parallel batch axis can shard across
    # TensorCores (v7x megacore). Falls back to N if no divisor reaches the target.
    target = max(1, -(-128 // P))                      # ceil(128 / P)
    divisors = [d for d in range(1, N + 1) if N % d == 0]
    for d in divisors:
        if d >= target:
            return d
    return divisors[-1]


def transformer_encoder(x, params, num_heads, block_batch=None):
    """x: (N, P, C) float32. params: dict of weights in PyTorch (out, in) layout."""
    N, P, C = x.shape
    head_dim = C // num_heads
    ffn_dim = params["w1"].shape[0]
    scaling = head_dim ** (-0.5)

    # ---- one-time host-side weight preparation (outside the kernel) ----
    # Fold the q scaling into the q rows of the qkv projection.
    wqkv = jnp.concatenate([params["wqkv"][:C] * scaling, params["wqkv"][C:]], axis=0)
    bqkv = jnp.concatenate([params["bqkv"][:C] * scaling, params["bqkv"][C:]], axis=0)
    # Transpose Linear weights to (in, out); make all 1-D params 2-D (1, dim).
    weights = [
        params["ln1_g"].reshape(1, C),
        params["ln1_b"].reshape(1, C),
        wqkv.T,                                # (C, 3C)
        bqkv.reshape(1, 3 * C),
        params["wo"].T,                        # (C, C)
        params["bo"].reshape(1, C),
        params["ln2_g"].reshape(1, C),
        params["ln2_b"].reshape(1, C),
        params["w1"].T,                        # (C, ffn)
        params["b1"].reshape(1, ffn_dim),
        params["w2"].T,                        # (ffn, C)
        params["b2"].reshape(1, C),
    ]

    if block_batch is None:
        block_batch = _choose_block_batch(N, P)
    Nb = block_batch
    assert N % Nb == 0, "block_batch must divide N"
    grid = (N // Nb,)

    def wspec(w):
        return pl.BlockSpec(w.shape, lambda b: (0, 0))

    kernel = functools.partial(_encoder_kernel,
                               num_heads=num_heads, head_dim=head_dim, eps=1e-5)

    return pl.pallas_call(
        kernel,
        out_shape=jax.ShapeDtypeStruct((N, P, C), x.dtype),
        grid_spec=pltpu.PrefetchScalarGridSpec(
            num_scalar_prefetch=0,
            grid=grid,
            in_specs=[pl.BlockSpec((Nb, P, C), lambda b: (b, 0, 0))]
                     + [wspec(w) for w in weights],
            out_specs=pl.BlockSpec((Nb, P, C), lambda b: (b, 0, 0)),
        ),
        compiler_params=pltpu.CompilerParams(dimension_semantics=("parallel",)),
    )(x, *weights)


def _reference(x, p, num_heads):
    # pure-JAX reference mirroring the PyTorch forward_default path
    N, P, C = x.shape
    hd = C // num_heads
    eps = 1e-5

    def ln(v, g, b):
        mu = jnp.mean(v, axis=-1, keepdims=True)
        var = jnp.mean((v - mu) ** 2, axis=-1, keepdims=True)
        return (v - mu) / jnp.sqrt(var + eps) * g + b

    xn = ln(x, p["ln1_g"], p["ln1_b"])
    qkv = xn @ p["wqkv"].T + p["bqkv"]                                   # (N,P,3C)
    qkv = qkv.reshape(N, P, 3, num_heads, hd).transpose(0, 3, 2, 1, 4)   # (N,H,3,P,hd)
    q, k, v = qkv[:, :, 0], qkv[:, :, 1], qkv[:, :, 2]
    attn = jax.nn.softmax((q * hd ** -0.5) @ jnp.swapaxes(k, -1, -2), axis=-1)
    out = (attn @ v).transpose(0, 2, 1, 3).reshape(N, P, C)
    y = x + (out @ p["wo"].T + p["bo"])
    yn = ln(y, p["ln2_g"], p["ln2_b"])
    h1 = yn @ p["w1"].T + p["b1"]
    h1 = jax.nn.silu(h1)
    return y + (h1 @ p["w2"].T + p["b2"])


if __name__ == "__main__":
    N, P, C = 2, 16, 32          # batch, patches, embed_dim
    num_heads = 4
    ffn_dim = 64

    key = jax.random.PRNGKey(0)
    ks = jax.random.split(key, 8)
    params = {
        "ln1_g": jnp.ones((C,), jnp.float32),
        "ln1_b": jnp.zeros((C,), jnp.float32),
        "wqkv": 0.05 * jax.random.normal(ks[0], (3 * C, C), jnp.float32),
        "bqkv": 0.01 * jax.random.normal(ks[1], (3 * C,), jnp.float32),
        "wo": 0.05 * jax.random.normal(ks[2], (C, C), jnp.float32),
        "bo": 0.01 * jax.random.normal(ks[3], (C,), jnp.float32),
        "ln2_g": jnp.ones((C,), jnp.float32),
        "ln2_b": jnp.zeros((C,), jnp.float32),
        "w1": 0.05 * jax.random.normal(ks[4], (ffn_dim, C), jnp.float32),
        "b1": 0.01 * jax.random.normal(ks[5], (ffn_dim,), jnp.float32),
        "w2": 0.05 * jax.random.normal(ks[6], (C, ffn_dim), jnp.float32),
        "b2": 0.01 * jax.random.normal(ks[7], (C,), jnp.float32),
    }

    x = jax.random.normal(jax.random.PRNGKey(42), (N, P, C), jnp.float32)

    out = transformer_encoder(x, params, num_heads)
    out = jax.block_until_ready(out)

    ref = _reference(x, params, num_heads)
    # Slightly looser tolerance only because of the approx (EUP) reciprocal in softmax.
    if not bool(jnp.allclose(out, ref, atol=2e-3, rtol=2e-3)):
        raise AssertionError("Pallas output does not match reference")

    print("KERNEL_OK")
</pallas_src>

<mosaic_0001>
module attributes {stable_mosaic.version = 11 : i64} {
  func.func @_encoder_kernel(%arg0: i32, %arg1: memref<2x16x32xf32, #tpu.memory_space<vmem>>, %arg2: memref<1x32xf32, #tpu.memory_space<vmem>>, %arg3: memref<1x32xf32, #tpu.memory_space<vmem>>, %arg4: memref<32x96xf32, #tpu.memory_space<vmem>>, %arg5: memref<1x96xf32, #tpu.memory_space<vmem>>, %arg6: memref<32x32xf32, #tpu.memory_space<vmem>>, %arg7: memref<1x32xf32, #tpu.memory_space<vmem>>, %arg8: memref<1x32xf32, #tpu.memory_space<vmem>>, %arg9: memref<1x32xf32, #tpu.memory_space<vmem>>, %arg10: memref<32x64xf32, #tpu.memory_space<vmem>>, %arg11: memref<1x64xf32, #tpu.memory_space<vmem>>, %arg12: memref<64x32xf32, #tpu.memory_space<vmem>>, %arg13: memref<1x32xf32, #tpu.memory_space<vmem>>, %arg14: memref<2x16x32xf32, #tpu.memory_space<vmem>>) attributes {dimension_semantics = [#tpu.dimension_semantics<parallel>], iteration_bounds = array<i64: 1>, scalar_prefetch = 0 : i64, scratch_operands = 0 : i64, tpu.core_type = #tpu.core_type<tc>, window_params = [{transform_indices = @transform_0, window_bounds = array<i64: 2, 16, 32>}, {pipeline_mode = #tpu.pipeline_mode<synchronous>, transform_indices = @transform_1, window_bounds = array<i64: 1, 32>}, {pipeline_mode = #tpu.pipeline_mode<synchronous>, transform_indices = @transform_2, window_bounds = array<i64: 1, 32>}, {pipeline_mode = #tpu.pipeline_mode<synchronous>, transform_indices = @transform_3, window_bounds = array<i64: 32, 96>}, {pipeline_mode = #tpu.pipeline_mode<synchronous>, transform_indices = @transform_4, window_bounds = array<i64: 1, 96>}, {pipeline_mode = #tpu.pipeline_mode<synchronous>, transform_indices = @transform_5, window_bounds = array<i64: 32, 32>}, {pipeline_mode = #tpu.pipeline_mode<synchronous>, transform_indices = @transform_6, window_bounds = array<i64: 1, 32>}, {pipeline_mode = #tpu.pipeline_mode<synchronous>, transform_indices = @transform_7, window_bounds = array<i64: 1, 32>}, {pipeline_mode = #tpu.pipeline_mode<synchronous>, transform_indices = @transform_8, window_bounds = array<i64: 1, 32>}, {pipeline_mode = #tpu.pipeline_mode<synchronous>, transform_indices = @transform_9, window_bounds = array<i64: 32, 64>}, {pipeline_mode = #tpu.pipeline_mode<synchronous>, transform_indices = @transform_10, window_bounds = array<i64: 1, 64>}, {pipeline_mode = #tpu.pipeline_mode<synchronous>, transform_indices = @transform_11, window_bounds = array<i64: 64, 32>}, {pipeline_mode = #tpu.pipeline_mode<synchronous>, transform_indices = @transform_12, window_bounds = array<i64: 1, 32>}, {transform_indices = @transform_13, window_bounds = array<i64: 2, 16, 32>}]} {
    %c0 = arith.constant 0 : index
    %c0_0 = arith.constant 0 : index
    %c0_1 = arith.constant 0 : index
    %0 = vector.load %arg1[%c0, %c0_0, %c0_1] : memref<2x16x32xf32, #tpu.memory_space<vmem>>, vector<2x16x32xf32>
    %1 = vector.shape_cast %0 : vector<2x16x32xf32> to vector<32x32xf32>
    %cst = arith.constant dense<0.000000e+00> : vector<32xf32>
    %2 = vector.multi_reduction <add>, %1, %cst [1] : vector<32x32xf32> to vector<32xf32>
    %3 = vector.shape_cast %2 : vector<32xf32> to vector<32x1xf32>
    %cst_2 = arith.constant 3.200000e+01 : f32
    %4 = vector.broadcast %cst_2 : f32 to vector<32x1xf32>
    %5 = arith.divf %3, %4 : vector<32x1xf32>
    %6 = vector.broadcast %5 : vector<32x1xf32> to vector<32x32xf32>
    %7 = arith.subf %1, %6 : vector<32x32xf32>
    %8 = arith.mulf %7, %7 : vector<32x32xf32>
    %cst_3 = arith.constant dense<0.000000e+00> : vector<32xf32>
    %9 = vector.multi_reduction <add>, %8, %cst_3 [1] : vector<32x32xf32> to vector<32xf32>
    %10 = vector.shape_cast %9 : vector<32xf32> to vector<32x1xf32>
    %cst_4 = arith.constant 3.200000e+01 : f32
    %11 = vector.broadcast %cst_4 : f32 to vector<32x1xf32>
    %12 = arith.divf %10, %11 : vector<32x1xf32>
    %13 = vector.broadcast %5 : vector<32x1xf32> to vector<32x32xf32>
    %14 = arith.subf %1, %13 : vector<32x32xf32>
    %cst_5 = arith.constant 9.99999974E-6 : f32
    %15 = vector.broadcast %cst_5 : f32 to vector<32x1xf32>
    %16 = arith.addf %12, %15 : vector<32x1xf32>
    %17 = math.rsqrt %16 : vector<32x1xf32>
    %18 = vector.broadcast %17 : vector<32x1xf32> to vector<32x32xf32>
    %19 = arith.mulf %14, %18 : vector<32x32xf32>
    %c0_6 = arith.constant 0 : index
    %c0_7 = arith.constant 0 : index
    %20 = vector.load %arg2[%c0_6, %c0_7] : memref<1x32xf32, #tpu.memory_space<vmem>>, vector<1x32xf32>
    %21 = vector.broadcast %20 : vector<1x32xf32> to vector<32x32xf32>
    %22 = arith.mulf %19, %21 : vector<32x32xf32>
    %c0_8 = arith.constant 0 : index
    %c0_9 = arith.constant 0 : index
    %23 = vector.load %arg3[%c0_8, %c0_9] : memref<1x32xf32, #tpu.memory_space<vmem>>, vector<1x32xf32>
    %24 = vector.broadcast %23 : vector<1x32xf32> to vector<32x32xf32>
    %25 = arith.addf %22, %24 : vector<32x32xf32>
    %c0_10 = arith.constant 0 : index
    %c0_11 = arith.constant 0 : index
    %26 = vector.load %arg4[%c0_10, %c0_11] : memref<32x96xf32, #tpu.memory_space<vmem>>, vector<32x96xf32>
    %cst_12 = arith.constant dense<0.000000e+00> : vector<32x96xf32>
    %27 = tpu.matmul %25, %26, %cst_12 {dimension_numbers = #tpu.dot_dimension_numbers<[1], [0], [0], [1], [0, 0, 1, 1], [], []>} : vector<32x32xf32>, vector<32x96xf32>, vector<32x96xf32> -> vector<32x96xf32>
    %c0_13 = arith.constant 0 : index
    %c0_14 = arith.constant 0 : index
    %28 = vector.load %arg5[%c0_13, %c0_14] : memref<1x96xf32, #tpu.memory_space<vmem>>, vector<1x96xf32>
    %29 = vector.broadcast %28 : vector<1x96xf32> to vector<32x96xf32>
    %30 = arith.addf %27, %29 : vector<32x96xf32>
    %31 = vector.shape_cast %30 : vector<32x96xf32> to vector<2x16x96xf32>
    %32 = vector.extract_strided_slice %31 {offsets = [0, 0, 0], sizes = [2, 16, 8], strides = [1, 1, 1]} : vector<2x16x96xf32> to vector<2x16x8xf32>
    %33 = vector.extract_strided_slice %31 {offsets = [0, 0, 32], sizes = [2, 16, 8], strides = [1, 1, 1]} : vector<2x16x96xf32> to vector<2x16x8xf32>
    %34 = vector.extract_strided_slice %31 {offsets = [0, 0, 64], sizes = [2, 16, 8], strides = [1, 1, 1]} : vector<2x16x96xf32> to vector<2x16x8xf32>
    "tpu.trace_start"() <{level = 10 : i32, message = "bqd,bkd->bqk"}> : () -> ()
    %cst_15 = arith.constant dense<0.000000e+00> : vector<2x16x16xf32>
    %35 = tpu.matmul %32, %33, %cst_15 {dimension_numbers = #tpu.dot_dimension_numbers<[2], [2], [1], [1], [0, 0, 0, 1, 1, 1], [0], [0]>} : vector<2x16x8xf32>, vector<2x16x8xf32>, vector<2x16x16xf32> -> vector<2x16x16xf32>
    "tpu.trace_stop"() : () -> ()
    %cst_16 = arith.constant dense<0xFF800000> : vector<2x16xf32>
    %36 = vector.multi_reduction <maximumf>, %35, %cst_16 [2] : vector<2x16x16xf32> to vector<2x16xf32>
    %37 = vector.shape_cast %36 : vector<2x16xf32> to vector<2x16x1xf32>
    %38 = vector.broadcast %37 : vector<2x16x1xf32> to vector<2x16x16xf32>
    %39 = arith.subf %35, %38 : vector<2x16x16xf32>
    %40 = math.exp %39 : vector<2x16x16xf32>
    %cst_17 = arith.constant dense<0.000000e+00> : vector<2x16xf32>
    %41 = vector.multi_reduction <add>, %40, %cst_17 [2] : vector<2x16x16xf32> to vector<2x16xf32>
    %42 = vector.shape_cast %41 : vector<2x16xf32> to vector<2x16x1xf32>
    %43 = tpu.reciprocal %42 {approx = true} : vector<2x16x1xf32> -> vector<2x16x1xf32>
    %44 = vector.broadcast %43 : vector<2x16x1xf32> to vector<2x16x16xf32>
    %45 = arith.mulf %40, %44 : vector<2x16x16xf32>
    "tpu.trace_start"() <{level = 10 : i32, message = "bqk,bkd->bqd"}> : () -> ()
    %cst_18 = arith.constant dense<0.000000e+00> : vector<2x16x8xf32>
    %46 = tpu.matmul %45, %34, %cst_18 {dimension_numbers = #tpu.dot_dimension_numbers<[2], [1], [1], [2], [0, 0, 0, 1, 1, 2], [0], [0]>} : vector<2x16x16xf32>, vector<2x16x8xf32>, vector<2x16x8xf32> -> vector<2x16x8xf32>
    "tpu.trace_stop"() : () -> ()
    %47 = vector.extract_strided_slice %31 {offsets = [0, 0, 8], sizes = [2, 16, 8], strides = [1, 1, 1]} : vector<2x16x96xf32> to vector<2x16x8xf32>
    %48 = vector.extract_strided_slice %31 {offsets = [0, 0, 40], sizes = [2, 16, 8], strides = [1, 1, 1]} : vector<2x16x96xf32> to vector<2x16x8xf32>
    %49 = vector.extract_strided_slice %31 {offsets = [0, 0, 72], sizes = [2, 16, 8], strides = [1, 1, 1]} : vector<2x16x96xf32> to vector<2x16x8xf32>
    "tpu.trace_start"() <{level = 10 : i32, message = "bqd,bkd->bqk"}> : () -> ()
    %cst_19 = arith.constant dense<0.000000e+00> : vector<2x16x16xf32>
    %50 = tpu.matmul %47, %48, %cst_19 {dimension_numbers = #tpu.dot_dimension_numbers<[2], [2], [1], [1], [0, 0, 0, 1, 1, 1], [0], [0]>} : vector<2x16x8xf32>, vector<2x16x8xf32>, vector<2x16x16xf32> -> vector<2x16x16xf32>
    "tpu.trace_stop"() : () -> ()
    %cst_20 = arith.constant dense<0xFF800000> : vector<2x16xf32>
    %51 = vector.multi_reduction <maximumf>, %50, %cst_20 [2] : vector<2x16x16xf32> to vector<2x16xf32>
    %52 = vector.shape_cast %51 : vector<2x16xf32> to vector<2x16x1xf32>
    %53 = vector.broadcast %52 : vector<2x16x1xf32> to vector<2x16x16xf32>
    %54 = arith.subf %50, %53 : vector<2x16x16xf32>
    %55 = math.exp %54 : vector<2x16x16xf32>
    %cst_21 = arith.constant dense<0.000000e+00> : vector<2x16xf32>
    %56 = vector.multi_reduction <add>, %55, %cst_21 [2] : vector<2x16x16xf32> to vector<2x16xf32>
    %57 = vector.shape_cast %56 : vector<2x16xf32> to vector<2x16x1xf32>
    %58 = tpu.reciprocal %57 {approx = true} : vector<2x16x1xf32> -> vector<2x16x1xf32>
    %59 = vector.broadcast %58 : vector<2x16x1xf32> to vector<2x16x16xf32>
    %60 = arith.mulf %55, %59 : vector<2x16x16xf32>
    "tpu.trace_start"() <{level = 10 : i32, message = "bqk,bkd->bqd"}> : () -> ()
    %cst_22 = arith.constant dense<0.000000e+00> : vector<2x16x8xf32>
    %61 = tpu.matmul %60, %49, %cst_22 {dimension_numbers = #tpu.dot_dimension_numbers<[2], [1], [1], [2], [0, 0, 0, 1, 1, 2], [0], [0]>} : vector<2x16x16xf32>, vector<2x16x8xf32>, vector<2x16x8xf32> -> vector<2x16x8xf32>
    "tpu.trace_stop"() : () -> ()
    %62 = vector.extract_strided_slice %31 {offsets = [0, 0, 16], sizes = [2, 16, 8], strides = [1, 1, 1]} : vector<2x16x96xf32> to vector<2x16x8xf32>
    %63 = vector.extract_strided_slice %31 {offsets = [0, 0, 48], sizes = [2, 16, 8], strides = [1, 1, 1]} : vector<2x16x96xf32> to vector<2x16x8xf32>
    %64 = vector.extract_strided_slice %31 {offsets = [0, 0, 80], sizes = [2, 16, 8], strides = [1, 1, 1]} : vector<2x16x96xf32> to vector<2x16x8xf32>
    "tpu.trace_start"() <{level = 10 : i32, message = "bqd,bkd->bqk"}> : () -> ()
    %cst_23 = arith.constant dense<0.000000e+00> : vector<2x16x16xf32>
    %65 = tpu.matmul %62, %63, %cst_23 {dimension_numbers = #tpu.dot_dimension_numbers<[2], [2], [1], [1], [0, 0, 0, 1, 1, 1], [0], [0]>} : vector<2x16x8xf32>, vector<2x16x8xf32>, vector<2x16x16xf32> -> vector<2x16x16xf32>
    "tpu.trace_stop"() : () -> ()
    %cst_24 = arith.constant dense<0xFF800000> : vector<2x16xf32>
    %66 = vector.multi_reduction <maximumf>, %65, %cst_24 [2] : vector<2x16x16xf32> to vector<2x16xf32>
    %67 = vector.shape_cast %66 : vector<2x16xf32> to vector<2x16x1xf32>
    %68 = vector.broadcast %67 : vector<2x16x1xf32> to vector<2x16x16xf32>
    %69 = arith.subf %65, %68 : vector<2x16x16xf32>
    %70 = math.exp %69 : vector<2x16x16xf32>
    %cst_25 = arith.constant dense<0.000000e+00> : vector<2x16xf32>
    %71 = vector.multi_reduction <add>, %70, %cst_25 [2] : vector<2x16x16xf32> to vector<2x16xf32>
    %72 = vector.shape_cast %71 : vector<2x16xf32> to vector<2x16x1xf32>
    %73 = tpu.reciprocal %72 {approx = true} : vector<2x16x1xf32> -> vector<2x16x1xf32>
    %74 = vector.broadcast %73 : vector<2x16x1xf32> to vector<2x16x16xf32>
    %75 = arith.mulf %70, %74 : vector<2x16x16xf32>
    "tpu.trace_start"() <{level = 10 : i32, message = "bqk,bkd->bqd"}> : () -> ()
    %cst_26 = arith.constant dense<0.000000e+00> : vector<2x16x8xf32>
    %76 = tpu.matmul %75, %64, %cst_26 {dimension_numbers = #tpu.dot_dimension_numbers<[2], [1], [1], [2], [0, 0, 0, 1, 1, 2], [0], [0]>} : vector<2x16x16xf32>, vector<2x16x8xf32>, vector<2x16x8xf32> -> vector<2x16x8xf32>
    "tpu.trace_stop"() : () -> ()
    %77 = vector.extract_strided_slice %31 {offsets = [0, 0, 24], sizes = [2, 16, 8], strides = [1, 1, 1]} : vector<2x16x96xf32> to vector<2x16x8xf32>
    %78 = vector.extract_strided_slice %31 {offsets = [0, 0, 56], sizes = [2, 16, 8], strides = [1, 1, 1]} : vector<2x16x96xf32> to vector<2x16x8xf32>
    %79 = vector.extract_strided_slice %31 {offsets = [0, 0, 88], sizes = [2, 16, 8], strides = [1, 1, 1]} : vector<2x16x96xf32> to vector<2x16x8xf32>
    "tpu.trace_start"() <{level = 10 : i32, message = "bqd,bkd->bqk"}> : () -> ()
    %cst_27 = arith.constant dense<0.000000e+00> : vector<2x16x16xf32>
    %80 = tpu.matmul %77, %78, %cst_27 {dimension_numbers = #tpu.dot_dimension_numbers<[2], [2], [1], [1], [0, 0, 0, 1, 1, 1], [0], [0]>} : vector<2x16x8xf32>, vector<2x16x8xf32>, vector<2x16x16xf32> -> vector<2x16x16xf32>
    "tpu.trace_stop"() : () -> ()
    %cst_28 = arith.constant dense<0xFF800000> : vector<2x16xf32>
    %81 = vector.multi_reduction <maximumf>, %80, %cst_28 [2] : vector<2x16x16xf32> to vector<2x16xf32>
    %82 = vector.shape_cast %81 : vector<2x16xf32> to vector<2x16x1xf32>
    %83 = vector.broadcast %82 : vector<2x16x1xf32> to vector<2x16x16xf32>
    %84 = arith.subf %80, %83 : vector<2x16x16xf32>
    %85 = math.exp %84 : vector<2x16x16xf32>
    %cst_29 = arith.constant dense<0.000000e+00> : vector<2x16xf32>
    %86 = vector.multi_reduction <add>, %85, %cst_29 [2] : vector<2x16x16xf32> to vector<2x16xf32>
    %87 = vector.shape_cast %86 : vector<2x16xf32> to vector<2x16x1xf32>
    %88 = tpu.reciprocal %87 {approx = true} : vector<2x16x1xf32> -> vector<2x16x1xf32>
    %89 = vector.broadcast %88 : vector<2x16x1xf32> to vector<2x16x16xf32>
    %90 = arith.mulf %85, %89 : vector<2x16x16xf32>
    "tpu.trace_start"() <{level = 10 : i32, message = "bqk,bkd->bqd"}> : () -> ()
    %cst_30 = arith.constant dense<0.000000e+00> : vector<2x16x8xf32>
    %91 = tpu.matmul %90, %79, %cst_30 {dimension_numbers = #tpu.dot_dimension_numbers<[2], [1], [1], [2], [0, 0, 0, 1, 1, 2], [0], [0]>} : vector<2x16x16xf32>, vector<2x16x8xf32>, vector<2x16x8xf32> -> vector<2x16x8xf32>
    "tpu.trace_stop"() : () -> ()
    %92 = tpu.concatenate %46, %61, %76, %91 in 2 : vector<2x16x8xf32>, vector<2x16x8xf32>, vector<2x16x8xf32>, vector<2x16x8xf32> -> vector<2x16x32xf32>
    %93 = vector.shape_cast %92 : vector<2x16x32xf32> to vector<32x32xf32>
    %c0_31 = arith.constant 0 : index
    %c0_32 = arith.constant 0 : index
    %94 = vector.load %arg6[%c0_31, %c0_32] : memref<32x32xf32, #tpu.memory_space<vmem>>, vector<32x32xf32>
    %cst_33 = arith.constant dense<0.000000e+00> : vector<32x32xf32>
    %95 = tpu.matmul %93, %94, %cst_33 {dimension_numbers = #tpu.dot_dimension_numbers<[1], [0], [0], [1], [0, 0, 1, 1], [], []>} : vector<32x32xf32>, vector<32x32xf32>, vector<32x32xf32> -> vector<32x32xf32>
    %c0_34 = arith.constant 0 : index
    %c0_35 = arith.constant 0 : index
    %96 = vector.load %arg7[%c0_34, %c0_35] : memref<1x32xf32, #tpu.memory_space<vmem>>, vector<1x32xf32>
    %97 = vector.broadcast %96 : vector<1x32xf32> to vector<32x32xf32>
    %98 = arith.addf %95, %97 : vector<32x32xf32>
    %99 = arith.addf %1, %98 : vector<32x32xf32>
    %cst_36 = arith.constant dense<0.000000e+00> : vector<32xf32>
    %100 = vector.multi_reduction <add>, %99, %cst_36 [1] : vector<32x32xf32> to vector<32xf32>
    %101 = vector.shape_cast %100 : vector<32xf32> to vector<32x1xf32>
    %cst_37 = arith.constant 3.200000e+01 : f32
    %102 = vector.broadcast %cst_37 : f32 to vector<32x1xf32>
    %103 = arith.divf %101, %102 : vector<32x1xf32>
    %104 = vector.broadcast %103 : vector<32x1xf32> to vector<32x32xf32>
    %105 = arith.subf %99, %104 : vector<32x32xf32>
    %106 = arith.mulf %105, %105 : vector<32x32xf32>
    %cst_38 = arith.constant dense<0.000000e+00> : vector<32xf32>
    %107 = vector.multi_reduction <add>, %106, %cst_38 [1] : vector<32x32xf32> to vector<32xf32>
    %108 = vector.shape_cast %107 : vector<32xf32> to vector<32x1xf32>
    %cst_39 = arith.constant 3.200000e+01 : f32
    %109 = vector.broadcast %cst_39 : f32 to vector<32x1xf32>
    %110 = arith.divf %108, %109 : vector<32x1xf32>
    %111 = vector.broadcast %103 : vector<32x1xf32> to vector<32x32xf32>
    %112 = arith.subf %99, %111 : vector<32x32xf32>
    %cst_40 = arith.constant 9.99999974E-6 : f32
    %113 = vector.broadcast %cst_40 : f32 to vector<32x1xf32>
    %114 = arith.addf %110, %113 : vector<32x1xf32>
    %115 = math.rsqrt %114 : vector<32x1xf32>
    %116 = vector.broadcast %115 : vector<32x1xf32> to vector<32x32xf32>
    %117 = arith.mulf %112, %116 : vector<32x32xf32>
    %c0_41 = arith.constant 0 : index
    %c0_42 = arith.constant 0 : index
    %118 = vector.load %arg8[%c0_41, %c0_42] : memref<1x32xf32, #tpu.memory_space<vmem>>, vector<1x32xf32>
    %119 = vector.broadcast %118 : vector<1x32xf32> to vector<32x32xf32>
    %120 = arith.mulf %117, %119 : vector<32x32xf32>
    %c0_43 = arith.constant 0 : index
    %c0_44 = arith.constant 0 : index
    %121 = vector.load %arg9[%c0_43, %c0_44] : memref<1x32xf32, #tpu.memory_space<vmem>>, vector<1x32xf32>
    %122 = vector.broadcast %121 : vector<1x32xf32> to vector<32x32xf32>
    %123 = arith.addf %120, %122 : vector<32x32xf32>
    %c0_45 = arith.constant 0 : index
    %c0_46 = arith.constant 0 : index
    %124 = vector.load %arg10[%c0_45, %c0_46] : memref<32x64xf32, #tpu.memory_space<vmem>>, vector<32x64xf32>
    %cst_47 = arith.constant dense<0.000000e+00> : vector<32x64xf32>
    %125 = tpu.matmul %123, %124, %cst_47 {dimension_numbers = #tpu.dot_dimension_numbers<[1], [0], [0], [1], [0, 0, 1, 1], [], []>} : vector<32x32xf32>, vector<32x64xf32>, vector<32x64xf32> -> vector<32x64xf32>
    %c0_48 = arith.constant 0 : index
    %c0_49 = arith.constant 0 : index
    %126 = vector.load %arg11[%c0_48, %c0_49] : memref<1x64xf32, #tpu.memory_space<vmem>>, vector<1x64xf32>
    %127 = vector.broadcast %126 : vector<1x64xf32> to vector<32x64xf32>
    %128 = arith.addf %125, %127 : vector<32x64xf32>
    %129 = arith.negf %128 : vector<32x64xf32>
    %130 = math.exp %129 : vector<32x64xf32>
    %cst_50 = arith.constant 1.000000e+00 : f32
    %131 = vector.broadcast %cst_50 : f32 to vector<32x64xf32>
    %132 = arith.addf %131, %130 : vector<32x64xf32>
    %133 = arith.divf %131, %132 : vector<32x64xf32>
    %134 = arith.mulf %128, %133 : vector<32x64xf32>
    %c0_51 = arith.constant 0 : index
    %c0_52 = arith.constant 0 : index
    %135 = vector.load %arg12[%c0_51, %c0_52] : memref<64x32xf32, #tpu.memory_space<vmem>>, vector<64x32xf32>
    %cst_53 = arith.constant dense<0.000000e+00> : vector<32x32xf32>
    %136 = tpu.matmul %134, %135, %cst_53 {dimension_numbers = #tpu.dot_dimension_numbers<[1], [0], [0], [1], [0, 0, 1, 1], [], []>} : vector<32x64xf32>, vector<64x32xf32>, vector<32x32xf32> -> vector<32x32xf32>
    %c0_54 = arith.constant 0 : index
    %c0_55 = arith.constant 0 : index
    %137 = vector.load %arg13[%c0_54, %c0_55] : memref<1x32xf32, #tpu.memory_space<vmem>>, vector<1x32xf32>
    %138 = vector.broadcast %137 : vector<1x32xf32> to vector<32x32xf32>
    %139 = arith.addf %136, %138 : vector<32x32xf32>
    %140 = arith.addf %99, %139 : vector<32x32xf32>
    %141 = vector.shape_cast %140 : vector<32x32xf32> to vector<2x16x32xf32>
    %c0_56 = arith.constant 0 : index
    %c0_57 = arith.constant 0 : index
    %c0_58 = arith.constant 0 : index
    %142 = vector.load %arg14[%c0_56, %c0_57, %c0_58] : memref<2x16x32xf32, #tpu.memory_space<vmem>>, vector<2x16x32xf32>
    tpu.vector_store %arg14[%c0_56, %c0_57, %c0_58], %141 {strides = array<i32>} : memref<2x16x32xf32, #tpu.memory_space<vmem>>, vector<2x16x32xf32>,
    return
  }
  func.func @transform_0(%arg0: i32) -> (i32, i32, i32) {
    %c0_i32 = arith.constant 0 : i32
    %c0_i32_0 = arith.constant 0 : i32
    %c0_i32_1 = arith.constant 0 : i32
    return %arg0, %c0_i32, %c0_i32_0 : i32, i32, i32
  }
  func.func @transform_1(%arg0: i32) -> (i32, i32) {
    %c0_i32 = arith.constant 0 : i32
    %c0_i32_0 = arith.constant 0 : i32
    %c0_i32_1 = arith.constant 0 : i32
    return %c0_i32, %c0_i32_0 : i32, i32
  }
  func.func @transform_2(%arg0: i32) -> (i32, i32) {
    %c0_i32 = arith.constant 0 : i32
    %c0_i32_0 = arith.constant 0 : i32
    %c0_i32_1 = arith.constant 0 : i32
    return %c0_i32, %c0_i32_0 : i32, i32
  }
  func.func @transform_3(%arg0: i32) -> (i32, i32) {
    %c0_i32 = arith.constant 0 : i32
    %c0_i32_0 = arith.constant 0 : i32
    %c0_i32_1 = arith.constant 0 : i32
    return %c0_i32, %c0_i32_0 : i32, i32
  }
  func.func @transform_4(%arg0: i32) -> (i32, i32) {
    %c0_i32 = arith.constant 0 : i32
    %c0_i32_0 = arith.constant 0 : i32
    %c0_i32_1 = arith.constant 0 : i32
    return %c0_i32, %c0_i32_0 : i32, i32
  }
  func.func @transform_5(%arg0: i32) -> (i32, i32) {
    %c0_i32 = arith.constant 0 : i32
    %c0_i32_0 = arith.constant 0 : i32
    %c0_i32_1 = arith.constant 0 : i32
    return %c0_i32, %c0_i32_0 : i32, i32
  }
  func.func @transform_6(%arg0: i32) -> (i32, i32) {
    %c0_i32 = arith.constant 0 : i32
    %c0_i32_0 = arith.constant 0 : i32
    %c0_i32_1 = arith.constant 0 : i32
    return %c0_i32, %c0_i32_0 : i32, i32
  }
  func.func @transform_7(%arg0: i32) -> (i32, i32) {
    %c0_i32 = arith.constant 0 : i32
    %c0_i32_0 = arith.constant 0 : i32
    %c0_i32_1 = arith.constant 0 : i32
    return %c0_i32, %c0_i32_0 : i32, i32
  }
  func.func @transform_8(%arg0: i32) -> (i32, i32) {
    %c0_i32 = arith.constant 0 : i32
    %c0_i32_0 = arith.constant 0 : i32
    %c0_i32_1 = arith.constant 0 : i32
    return %c0_i32, %c0_i32_0 : i32, i32
  }
  func.func @transform_9(%arg0: i32) -> (i32, i32) {
    %c0_i32 = arith.constant 0 : i32
    %c0_i32_0 = arith.constant 0 : i32
    %c0_i32_1 = arith.constant 0 : i32
    return %c0_i32, %c0_i32_0 : i32, i32
  }
  func.func @transform_10(%arg0: i32) -> (i32, i32) {
    %c0_i32 = arith.constant 0 : i32
    %c0_i32_0 = arith.constant 0 : i32
    %c0_i32_1 = arith.constant 0 : i32
    return %c0_i32, %c0_i32_0 : i32, i32
  }
  func.func @transform_11(%arg0: i32) -> (i32, i32) {
    %c0_i32 = arith.constant 0 : i32
    %c0_i32_0 = arith.constant 0 : i32
    %c0_i32_1 = arith.constant 0 : i32
    return %c0_i32, %c0_i32_0 : i32, i32
  }
  func.func @transform_12(%arg0: i32) -> (i32, i32) {
    %c0_i32 = arith.constant 0 : i32
    %c0_i32_0 = arith.constant 0 : i32
    %c0_i32_1 = arith.constant 0 : i32
    return %c0_i32, %c0_i32_0 : i32, i32
  }
  func.func @transform_13(%arg0: i32) -> (i32, i32, i32) {
    %c0_i32 = arith.constant 0 : i32
    %c0_i32_0 = arith.constant 0 : i32
    %c0_i32_1 = arith.constant 0 : i32
    return %arg0, %c0_i32, %c0_i32_0 : i32, i32, i32
  }
}

</mosaic_0001>

<bundles_post_ra>
// kernel: tpu_custom_call.1
= control target key start
LH: loop header
LB: loop body
LE: loop exit
PB: predicated region body
PF: predicated region fallthrough
CT: control target
= control target key end

     0   :  { %18 = vsyncpa [#allocation3], 0  ;;  %s2286_s0 = inlined_call_operand.vmem [shape: f32[2,16,32], index: 0, kind: input, shape index: {}]   ;;  %s2287_s1 = inlined_call_operand.hbm [shape: f32[1,32], index: 1, kind: input, shape index: {}]   ;;  %s2288_s2 = inlined_call_operand.vmem [shape: f32[1,32], index: 2, kind: input, shape index: {}]   ;;  %s2289_s3 = inlined_call_operand.vmem [shape: f32[32,96], index: 3, kind: input, shape index: {}]   ;;  %s2290_s4 = inlined_call_operand.vmem [shape: f32[1,96], index: 4, kind: input, shape index: {}]   ;;  %s2291_s5 = inlined_call_operand.vmem [shape: f32[32,32], index: 5, kind: input, shape index: {}]   ;;  %s2292_s6 = inlined_call_operand.vmem [shape: f32[1,32], index: 6, kind: input, shape index: {}]   ;;  %s2293_s7 = inlined_call_operand.vmem [shape: f32[1,32], index: 7, kind: input, shape index: {}]   ;;  %s2294_s8 = inlined_call_operand.vmem [shape: f32[1,32], index: 8, kind: input, shape index: {}]   ;;  %s2295_s9 = inlined_call_operand.hbm [shape: f32[32,64], index: 9, kind: input, shape index: {}]   ;;  %s2296_s10 = inlined_call_operand.vmem [shape: f32[1,64], index: 10, kind: input, shape index: {}]   ;;  %s2297_s11 = inlined_call_operand.vmem [shape: f32[64,32], index: 11, kind: input, shape index: {}]   ;;  %s2298_s12 = inlined_call_operand.vmem [shape: f32[1,32], index: 12, kind: input, shape index: {}]   ;;  %s2299_s13 = inlined_call_operand.hbm [shape: f32[2,16,32], index: 13, kind: output, shape index: {}]  }
   0x1   :  { %19 = vsyncpa [#allocation6], 0 }
   0x2   :  { %20 = vsyncpa [#allocation4], 0  ;;  %s28_s27 = sshll.u32 %s2287_s1, 4  ;;  %s1750_s28 = smov [#allocation2]   ;;  %s29_s27 = int_to_ptr.hbm [resolvable:$true] %s28_s27 }
   0x3   :  { %s30_s29 = sshll.u32 %s1750_s28, 4  ;;  %s52_s15 = sshll.u32 %s2295_s9, 4  ;;  %s31_s29 = int_to_ptr.vmem [resolvable:$true] %s30_s29  ;;  %s53_s15 = int_to_ptr.hbm [resolvable:$true] %s52_s15 }
   0x4   :  { %33 = dma.hbm_to_vmem [thread:$0]  %s29_s27, 16, %s31_s29, [#allocation3]  }
   0x5   :  { %s1751_s16 = smov [#allocation5]   ;;  %s1752_s18 = smov 128  }
   0x6   :  { %s54_s17 = sshll.u32 %s1751_s16, 4  ;;  %s1753_s19 = smov 8   ;;  %s55_s17 = int_to_ptr.vmem [resolvable:$true] %s54_s17 }
   0x7   :  { %60 = dma.hbm_to_vmem [thread:$0]  %s53_s15, 512, %s55_s17, [#allocation6], %s1752_s18, %s1752_s18, %s1753_s19  }
   0x8   :  { %1744 = dma.done.wait [#allocation3], 16  }
   0x9   :  { %1745 = vsyncadd [#allocation3], 4294967280 }
   0xa   :  { %1746 = dma.done.wait [#allocation6], 512  }
   0xb   :  { %1747 = vsyncadd [#allocation6], 4294966784  ;;  %vm79_vm0 = vcmask 261120   ;;  %v77_v0 = vld [vmem:[%s2286_s0 + $0x10] sm:$0xff]  ;;  %v75_v1 = vld [vmem:[%s2286_s0] sm:$0xff]  ;;  %v1754_v8 = vmov 32.0  }
   0xc   :  { %v86_v2 = vsel %vm79_vm0, %v77_v0, 0.0  ;;  %v80_v3 = vsel %vm79_vm0, %v75_v1, 0.0  ;;  %v78_v4 = vld [vmem:[%s2286_s0 + $0x18] sm:$0xff]  ;;  %v76_v5 = vld [vmem:[%s2286_s0 + $0x8] sm:$0xff]  ;;  %1570 = vrcp.f32 %v1754_v8  ;;  %v193_v36 = vld [vmem:[%s2289_s3 + $0x10] sm:$0xff]  ;;  %s1755_s20 = smov 96  }
   0xd   :  { %87 = vadd.xlane.f32.xlu1 %v86_v2  ;;  %81 = vadd.xlane.f32.xlu0 %v80_v3  ;;  %v89_v6 = vsel %vm79_vm0, %v78_v4, 0.0  ;;  %v83_v7 = vsel %vm79_vm0, %v76_v5, 0.0  ;;  %v194_v35 = vld [vmem:[%s2289_s3 + $0x18] sm:$0xff]  ;;  %v192_v37 = vld [vmem:[%s2289_s3 + $0x8] sm:$0xff]  ;;  %v191_v38 = vld [vmem:[%s2289_s3] sm:$0xff]  ;;  %s1756_s9 = smov 120  }
   0xe   :  { %223 = vmatpush.msra.mxu0 %v194_v35  ;;  %s1757_s21 = smov 80   ;;  %s1758_s22 = smov 88   ;;  %vm246_vm14 = vcmask 64512   ;;  %vm315_vm15 = vcmask 130048  }
   0xf   :  { %s1760_s23 = smov 104   ;;  %s1761_s24 = smov 72  }
  0x10   :  { %224 = vmatpush.msra.mxu0 %v193_v36  ;;  %s1762_s25 = smov 64   ;;  %s1763_s26 = smov 56  }
  0x11   :  { %s1764_s27 = smov 48   ;;  %s1765_s28 = smov 40  }
  0x12   :  { %v1571_v9 = vpop.eup %1570  ;;  %225 = vmatpush.msra.mxu0 %v192_v37  ;;  %s1766_s29 = smov 16   ;;  %s1767_s30 = smov 24  }
  0x13   :  { %v93_v10 = vmul.f32 32.0, %v1571_v9  ;;  %vm97_vm1 = vweird.f32 %v1571_v9 }
  0x14   :  { %226 = vmatpush.msra.mxu0 %v191_v38 }
  0x15   :  { %90 = vadd.xlane.f32.xlu1 %v89_v6  ;;  %84 = vadd.xlane.f32.xlu0 %v83_v7  ;;  %v94_v11 = vsub.f32 1.0, %v93_v10 }
  0x17   :  { %v95_v12 = vmul.f32 %v1571_v9, %v94_v11 }
  0x19   :  { %v96_v13 = vadd.f32 %v1571_v9, %v95_v12 }
  0x1b   :  { %v1864_v14 = vsel %vm97_vm1, %v1571_v9, %v96_v13  ;;  %vm1062_vm1 = vcmask 195584  }
  0x80   :  { %v88_v15 = vpop.xlane.xlu1 %87  ;;  %v82_v16 = vpop.xlane.xlu0 %81 }
  0x81   :  { %v101_v17 = vmul.f32 %v1864_v14, %v88_v15  ;;  %v99_v18 = vmul.f32 %v1864_v14, %v82_v16 }
  0x83   :  { %v1868_v19 = vsub.f32 %v77_v0, %v101_v17  ;;  %v1870_v20 = vsub.f32 %v75_v1, %v99_v18  ;;  %v1562_v1 = vld [vmem:[#allocation2] ss:$0 sm:$0xff] }
  0x85   :  { %v109_v21 = vmul.f32 %v1868_v19, %v1868_v19  ;;  %v107_v22 = vmul.f32 %v1870_v20, %v1870_v20 }
  0x87   :  { %v117_v23 = vsel %vm79_vm0, %v109_v21, 0.0  ;;  %v111_v24 = vsel %vm79_vm0, %v107_v22, 0.0 }
  0x88   :  { %v91_v25 = vpop.xlane.xlu1 %90  ;;  %118 = vadd.xlane.f32.xlu0 %v117_v23  ;;  %112 = vadd.xlane.f32.xlu2 %v111_v24  ;;  %v85_v26 = vpop.xlane.xlu0 %84 }
  0x89   :  { %v102_v27 = vmul.f32 %v1864_v14, %v91_v25  ;;  %v100_v28 = vmul.f32 %v1864_v14, %v85_v26 }
  0x8b   :  { %v1880_v29 = vsub.f32 %v78_v4, %v102_v27  ;;  %v1882_v30 = vsub.f32 %v76_v5, %v100_v28  ;;  %v1563_v5 = vld [vmem:[%s2288_s2] ss:$0 sm:$0xff] }
  0x8d   :  { %v110_v31 = vmul.f32 %v1880_v29, %v1880_v29  ;;  %v108_v32 = vmul.f32 %v1882_v30, %v1882_v30 }
  0x8f   :  { %v120_v33 = vsel %vm79_vm0, %v110_v31, 0.0  ;;  %v114_v34 = vsel %vm79_vm0, %v108_v32, 0.0 }
  0x90   :  { %121 = vadd.xlane.f32.xlu1 %v120_v33  ;;  %115 = vadd.xlane.f32.xlu2 %v114_v34 }
  0xfb   :  { %v113_v39 = vpop.xlane.xlu2 %112  ;;  %v119_v40 = vpop.xlane.xlu0 %118 }
  0xfc   :  { %v123_v41 = vmul.f32 %v113_v39, %v1864_v14  ;;  %v125_v42 = vmul.f32 %v119_v40, %v1864_v14 }
  0xfe   :  { %v127_v43 = vadd.f32 1e-05, %v123_v41  ;;  %v129_v44 = vadd.f32 1e-05, %v125_v42 }
 0x100   :  { %1572 = vrsqrt.f32 %v127_v43  ;;  %vm137_vm3 = vweird.f32 %v127_v43  ;;  %vm157_vm5 = vweird.f32 %v129_v44 }
 0x101   :  { %1574 = vrsqrt.f32 %v129_v44 }
 0x103   :  { %v122_v45 = vpop.xlane.xlu1 %121  ;;  %v116_v46 = vpop.xlane.xlu2 %115 }
 0x104   :  { %v126_v47 = vmul.f32 %v122_v45, %v1864_v14  ;;  %v124_v48 = vmul.f32 %v116_v46, %v1864_v14 }
 0x106   :  { %v1573_v49 = vpop.eup %1572  ;;  %v130_v50 = vadd.f32 1e-05, %v126_v47  ;;  %v128_v51 = vadd.f32 1e-05, %v124_v48 }
 0x107   :  { %v1575_v52 = vpop.eup %1574  ;;  %v132_v53 = vmul.f32 %v1573_v49, %v127_v43  ;;  %vm138_vm2 = vweird.f32 %v1573_v49 }
 0x108   :  { %v152_v54 = vmul.f32 %v1575_v52, %v129_v44  ;;  %1576 = vrsqrt.f32 %v130_v50  ;;  %vm139_vm4 = vmor %vm137_vm3, %vm138_vm2  ;;  %vm158_vm6 = vweird.f32 %v1575_v52  ;;  %vm147_vm9 = vweird.f32 %v128_v51 }
 0x109   :  { %v133_v55 = vmul.f32 %v1573_v49, %v132_v53  ;;  %1578 = vrsqrt.f32 %v128_v51  ;;  %vm159_vm8 = vmor %vm157_vm5, %vm158_vm6  ;;  %vm167_vm11 = vweird.f32 %v130_v50 }
 0x10a   :  { %v153_v57 = vmul.f32 %v1575_v52, %v152_v54 }
 0x10b   :  { %v134_v56 = vmul.f32 0.5, %v133_v55 }
 0x10c   :  { %v154_v62 = vmul.f32 0.5, %v153_v57 }
 0x10d   :  { %v135_v58 = vsub.f32 1.5, %v134_v56 }
 0x10e   :  { %v1577_v59 = vpop.eup %1576  ;;  %v155_v6 = vsub.f32 1.5, %v154_v62 }
 0x10f   :  { %v1579_v60 = vpop.eup %1578  ;;  %v136_v61 = vmul.f32 %v1573_v49, %v135_v58  ;;  %v162_v63 = vmul.f32 %v1577_v59, %v130_v50  ;;  %vm168_vm12 = vweird.f32 %v1577_v59 }
 0x110   :  { %v142_v0 = vmul.f32 %v1579_v60, %v128_v51  ;;  %vm148_vm7 = vweird.f32 %v1579_v60  ;;  %v156_v12 = vmul.f32 %v1575_v52, %v155_v6  ;;  %vm169_vm13 = vmor %vm167_vm11, %vm168_vm12 }
 0x111   :  { %v140_v2 = vsel %vm139_vm4, %v1573_v49, %v136_v61  ;;  %v163_v7 = vmul.f32 %v1577_v59, %v162_v63  ;;  %vm149_vm10 = vmor %vm147_vm9, %vm148_vm7 }
 0x112   :  { %v143_v3 = vmul.f32 %v1579_v60, %v142_v0  ;;  %v171_v4 = vmul.f32 %v140_v2, %v1870_v20  ;;  %v160_v18 = vsel %vm159_vm8, %v1575_v52, %v156_v12 }
 0x113   :  { %v164_v13 = vmul.f32 0.5, %v163_v7  ;;  %v173_v23 = vmul.f32 %v160_v18, %v1868_v19  ;;  %v1564_v19 = vld [vmem:[%s2290_s4] ss:$0 sm:$0xff]  ;;  %s1759_s4 = smov 112  }
 0x114   :  { %v144_v8 = vmul.f32 0.5, %v143_v3  ;;  %v179_v9 = vmul.f32 %v1562_v1, %v171_v4 }
 0x115   :  { %v165_v20 = vsub.f32 1.5, %v164_v13  ;;  %v181_v25 = vmul.f32 %v1562_v1, %v173_v23 }
 0x116   :  { %v145_v10 = vsub.f32 1.5, %v144_v8  ;;  %v187_v11 = vadd.f32 %v1563_v5, %v179_v9 }
 0x117   :  { %v166_v24 = vmul.f32 %v1577_v59, %v165_v20  ;;  %v189_v27 = vadd.f32 %v1563_v5, %v181_v25 }
 0x118   :  { %v146_v15 = vmul.f32 %v1579_v60, %v145_v10  ;;  %1435 = vmatmul.msk.f32.vlgmr.msra.gmra.mxu0 %vm79_vm0, %v187_v11 }
 0x119   :  { %v170_v26 = vsel %vm169_vm13, %v1577_v59, %v166_v24 }
 0x11a   :  { %v150_v16 = vsel %vm149_vm10, %v1579_v60, %v146_v15  ;;  %v174_v28 = vmul.f32 %v170_v26, %v1880_v29 }
 0x11b   :  { %v172_v17 = vmul.f32 %v150_v16, %v1882_v30 }
 0x11c   :  { %v182_v30 = vmul.f32 %v1562_v1, %v174_v28 }
 0x11d   :  { %v180_v21 = vmul.f32 %v1562_v1, %v172_v17 }
 0x11e   :  { %v190_v31 = vadd.f32 %v1563_v5, %v182_v30 }
 0x11f   :  { %v188_v22 = vadd.f32 %v1563_v5, %v180_v21 }
 0x121   :  { %1436 = vmatmul.msk.f32.gmra.mxu0 %vm79_vm0, %v188_v22 }
 0x129   :  { %1437 = vmatmul.msk.f32.gmra.mxu0 %vm79_vm0, %v189_v27 }
 0x131   :  { %1438 = vmatmul.msk.f32.gmra.mxu0 %vm79_vm0, %v190_v31 }
 0x195   :  { %v228_v32 = vpop.f32.mrf.mxu0 }
 0x196   :  { %v229_v36 = vadd.f32 %v1564_v19, %v228_v32 }
 0x19e   :  { %v231_v33 = vpop.f32.mrf.mxu0 }
 0x19f   :  { %v232_v34 = vadd.f32 %v1564_v19, %v231_v33 }
 0x1a1   :  { %244 = vrot.lane.b32.xlu1 %v232_v34, %s1755_s20  ;;  %v1923_v40 = vpack.i.bf16 %v229_v36, %v232_v34 }
 0x1a6   :  { %v234_v35 = vpop.f32.mrf.mxu0 }
 0x1a7   :  { %v235_v37 = vadd.f32 %v1564_v19, %v234_v35 }
 0x1a9   :  { %430 = vrot.lane.b32.xlu1 %v229_v36, %s1756_s9  ;;  %280 = vrot.lane.b32.xlu0 %v235_v37, %s1755_s20 }
 0x1ae   :  { %v237_v29 = vpop.f32.mrf.mxu0 }
 0x1af   :  { %v238_v38 = vadd.f32 %v1564_v19, %v237_v29 }
 0x1b1   :  { %628 = vrot.lane.b32.xlu1 %v232_v34, %s1757_s21  ;;  %282 = vrot.lane.b32.xlu2 %v238_v38, %s1755_s20  ;;  %v1920_v39 = vpack.i.bf16 %v235_v37, %v238_v38 }
 0x1b2   :  { %436 = vrot.lane.b32.xlu0 %v232_v34, %s1758_s22 }
 0x1b9   :  { %242 = vrot.lane.b32.xlu2 %v229_v36, %s1755_s20  ;;  %469 = vrot.lane.b32.xlu1 %v235_v37, %s1756_s9 }
 0x1ba   :  { %432 = vrot.lane.b32.xlu0 %v232_v34, %s1756_s9 }
 0x1c1   :  { %434 = vrot.lane.b32.xlu2 %v229_v36, %s1758_s22  ;;  %624 = vrot.lane.b32.xlu1 %v232_v34, %s1759_s4 }
 0x1c2   :  { %473 = vrot.lane.b32.xlu0 %v235_v37, %s1758_s22 }
 0x1c9   :  { %626 = vrot.lane.b32.xlu2 %v229_v36, %s1757_s21  ;;  %665 = vrot.lane.b32.xlu1 %v235_v37, %s1757_s21 }
 0x1ca   :  { %622 = vrot.lane.b32.xlu0 %v229_v36, %s1759_s4 }
 0x1d1   :  { %475 = vrot.lane.b32.xlu2 %v238_v38, %s1758_s22  ;;  %814 = vrot.lane.b32.xlu1 %v229_v36, %s1760_s23 }
 0x1d2   :  { %818 = vrot.lane.b32.xlu0 %v229_v36, %s1761_s24 }
 0x1d9   :  { %820 = vrot.lane.b32.xlu2 %v232_v34, %s1761_s24  ;;  %859 = vrot.lane.b32.xlu1 %v238_v38, %s1761_s24 }
 0x1da   :  { %667 = vrot.lane.b32.xlu0 %v238_v38, %s1757_s21 }
 0x1e1   :  { %471 = vrot.lane.b32.xlu2 %v238_v38, %s1756_s9  ;;  %855 = vrot.lane.b32.xlu1 %v238_v38, %s1760_s23 }
 0x1e2   :  { %663 = vrot.lane.b32.xlu0 %v238_v38, %s1759_s4 }
 0x1e9   :  { %661 = vrot.lane.b32.xlu2 %v235_v37, %s1759_s4  ;;  %1533 = vrot.lane.b32.xlu1 %v1920_v39, %s1762_s25 }
 0x1ea   :  { %857 = vrot.lane.b32.xlu0 %v235_v37, %s1761_s24 }
 0x1f1   :  { %816 = vrot.lane.b32.xlu2 %v232_v34, %s1760_s23 }
 0x1f2   :  { %1528 = vrot.lane.b32.xlu0 %v1923_v40, %s1762_s25 }
 0x1f9   :  { %853 = vrot.lane.b32.xlu2 %v235_v37, %s1760_s23 }
 0x201   :  { %1523 = vrot.lane.b32.xlu2 %v1923_v40, %s1763_s26 }
 0x20b   :  { %v283_v41 = vpop.permute.xlu2 %282 }
 0x20c   :  { %1443 = vmatpush.xpose.msk.msra.mxu2 %vm246_vm14, %v283_v41 }
 0x213   :  { %v245_v42 = vpop.permute.xlu1 %244  ;;  %v243_v43 = vpop.permute.xlu2 %242 }
 0x214   :  { %1439 = vmatpush.xpose.msk.msra.mxu1 %vm246_vm14, %v245_v42 }
 0x218   :  { %1440 = vmatpush.xpose.msk.msra.mxu1 %vm246_vm14, %v243_v43 }
 0x21b   :  { %v431_v44 = vpop.permute.xlu1 %430  ;;  %1441 = vmatmul.msk.f32.vlgmr.msra.gmra.mxu1 %vm246_vm14, %v229_v36  ;;  %v435_v45 = vpop.permute.xlu2 %434 }
 0x21c   :  { %v281_v46 = vpop.permute.xlu0 %280 }
 0x21d   :  { %1444 = vmatpush.xpose.msk.msra.mxu2 %vm246_vm14, %v281_v46 }
 0x220   :  { %1445 = vmatmul.msk.f32.vlgmr.msra.gmra.mxu2 %vm246_vm14, %v235_v37 }
 0x223   :  { %v629_v47 = vpop.permute.xlu1 %628  ;;  %1442 = vmatmul.msk.f32.gmra.mxu1 %vm246_vm14, %v232_v34  ;;  %v627_v48 = vpop.permute.xlu2 %626 }
 0x224   :  { %v437_v49 = vpop.permute.xlu0 %436 }
 0x225   :  { %1451 = vmatpush.xpose.msk.msrb.mxu1 %vm246_vm14, %v437_v49 }
 0x228   :  { %1446 = vmatmul.msk.f32.gmra.mxu2 %vm246_vm14, %v238_v38 }
 0x229   :  { %1452 = vmatpush.xpose.msk.msrb.mxu1 %vm246_vm14, %v435_v45 }
 0x22b   :  { %v476_v50 = vpop.permute.xlu2 %475  ;;  %v470_v51 = vpop.permute.xlu1 %469 }
 0x22c   :  { %1453 = vmatmul.msk.f32.vlgmr.msrb.gmra.mxu1 %vm246_vm14, %v431_v44  ;;  %v433_v52 = vpop.permute.xlu0 %432  ;;  %1455 = vmatpush.xpose.msk.msrb.mxu2 %vm246_vm14, %v476_v50 }
 0x22d   :  { %1463 = vmatpush.xpose.msk.msra.mxu1 %vm246_vm14, %v629_v47 }
 0x231   :  { %1464 = vmatpush.xpose.msk.msra.mxu1 %vm246_vm14, %v627_v48 }
 0x233   :  { %v821_v53 = vpop.permute.xlu2 %820  ;;  %v625_v54 = vpop.permute.xlu1 %624 }
 0x234   :  { %1454 = vmatmul.msk.f32.gmra.mxu1 %vm246_vm14, %v433_v52  ;;  %v474_v55 = vpop.permute.xlu0 %473 }
 0x235   :  { %1456 = vmatpush.xpose.msk.msrb.mxu2 %vm246_vm14, %v474_v55  ;;  %1475 = vmatpush.xpose.msk.msrb.mxu1 %vm246_vm14, %v821_v53 }
 0x238   :  { %1457 = vmatmul.msk.f32.vlgmr.msrb.gmra.mxu2 %vm246_vm14, %v470_v51 }
 0x23b   :  { %v472_v56 = vpop.permute.xlu2 %471  ;;  %v666_v57 = vpop.permute.xlu1 %665 }
 0x23c   :  { %v623_v58 = vpop.permute.xlu0 %622 }
 0x23d   :  { %1465 = vmatmul.msk.f32.vlgmr.msra.gmra.mxu1 %vm246_vm14, %v623_v58 }
 0x240   :  { %1458 = vmatmul.msk.f32.gmra.mxu2 %vm246_vm14, %v472_v56 }
 0x243   :  { %v662_v59 = vpop.permute.xlu2 %661  ;;  %v815_v60 = vpop.permute.xlu1 %814 }
 0x244   :  { %v819_v61 = vpop.permute.xlu0 %818 }
 0x245   :  { %1466 = vmatmul.msk.f32.gmra.mxu1 %vm246_vm14, %v625_v54 }
 0x246   :  { %1476 = vmatpush.xpose.msk.msrb.mxu1 %vm246_vm14, %v819_v61 }
 0x24b   :  { %v817_v62 = vpop.permute.xlu2 %816  ;;  %v860_v63 = vpop.permute.xlu1 %859 }
 0x24c   :  { %v668_v0 = vpop.permute.xlu0 %667 }
 0x24d   :  { %1467 = vmatpush.xpose.msk.msra.mxu2 %vm246_vm14, %v668_v0  ;;  %1477 = vmatmul.msk.f32.vlgmr.msrb.gmra.mxu1 %vm246_vm14, %v815_v60 }
 0x251   :  { %1468 = vmatpush.xpose.msk.msra.mxu2 %vm246_vm14, %v666_v57 }
 0x253   :  { %v854_v1 = vpop.permute.xlu2 %853  ;;  %v856_v2 = vpop.permute.xlu1 %855 }
 0x254   :  { %1469 = vmatmul.msk.f32.vlgmr.msra.gmra.mxu2 %vm246_vm14, %v662_v59  ;;  %v664_v3 = vpop.permute.xlu0 %663 }
 0x255   :  { %1479 = vmatpush.xpose.msk.msrb.mxu2 %vm246_vm14, %v860_v63  ;;  %1478 = vmatmul.msk.f32.gmra.mxu1 %vm246_vm14, %v817_v62 }
 0x25b   :  { %v1534_v4 = vpop.permute.xlu1 %1533  ;;  %v1524_v5 = vpop.permute.xlu2 %1523 }
 0x25c   :  { %1470 = vmatmul.msk.f32.gmra.mxu2 %vm246_vm14, %v664_v3  ;;  %v858_v6 = vpop.permute.xlu0 %857  ;;  %v1535_v7 = vunpack.i.l.bf16 %v1534_v4  ;;  %v1536_v8 = vunpack.i.h.bf16 %v1534_v4  ;;  %v1525_v9 = vunpack.i.l.bf16 %v1524_v5  ;;  %v1526_v10 = vunpack.i.h.bf16 %v1524_v5 }
 0x25d   :  { %1480 = vmatpush.xpose.msk.msrb.mxu2 %vm246_vm14, %v858_v6 }
 0x25e   :  { %421 = vmatpush.msra.mxu3 %v1535_v7 }
 0x260   :  { %422 = vmatpush.msra.mxu3 %v1536_v8 }
 0x262   :  { %578 = vmatpush.msrb.mxu3 %v1525_v9 }
 0x264   :  { %579 = vmatpush.msrb.mxu3 %v1526_v10  ;;  %1481 = vmatmul.msk.f32.vlgmr.msrb.gmra.mxu2 %vm246_vm14, %v854_v1  ;;  %v1529_v11 = vpop.permute.xlu0 %1528 }
 0x265   :  { %v1530_v12 = vunpack.i.l.bf16 %v1529_v11  ;;  %v1531_v13 = vunpack.i.h.bf16 %v1529_v11 }
 0x267   :  { %386 = vmatpush.msrb.mxu0 %v1530_v12 }
 0x269   :  { %387 = vmatpush.msrb.mxu0 %v1531_v13 }
 0x26c   :  { %1482 = vmatmul.msk.f32.gmra.mxu2 %vm246_vm14, %v856_v2 }
 0x298   :  { %v272_v15 = vpop.f32.mrf.mxu1 }
 0x299   :  { %v316_v16 = vsel %vm315_vm15, %v272_v15, -inf }
 0x29a   :  { %317 = vmax.xlane.f32.xlu0 %v316_v16 }
 0x2a0   :  { %v275_v17 = vpop.f32.mrf.mxu1 }
 0x2a1   :  { %v319_v18 = vsel %vm315_vm15, %v275_v17, -inf }
 0x2a2   :  { %320 = vmax.xlane.f32.xlu1 %v319_v18 }
 0x2a3   :  { %v309_v20 = vpop.f32.mrf.mxu2 }
 0x2a4   :  { %v322_v21 = vsel %vm315_vm15, %v309_v20, -inf }
 0x2a5   :  { %323 = vmax.xlane.f32.xlu0 %v322_v21 }
 0x2a9   :  { %v463_v22 = vpop.f32.mrf.mxu1 }
 0x2aa   :  { %v508_v23 = vsel %vm315_vm15, %v463_v22, -inf }
 0x2ab   :  { %509 = vmax.xlane.f32.xlu1 %v508_v23  ;;  %v1968_v26 = vpop.f32.mrf.mxu2 }
 0x2ac   :  { %v325_v28 = vsel %vm315_vm15, %v1968_v26, -inf }
 0x2b1   :  { %v1964_v24 = vpop.f32.mrf.mxu1 }
 0x2b2   :  { %v511_v25 = vsel %vm315_vm15, %v1964_v24, -inf }
 0x2b3   :  { %512 = vmax.xlane.f32.xlu2 %v511_v25 }
 0x2ba   :  { %v1970_v27 = vpop.f32.mrf.mxu1 }
 0x2bb   :  { %326 = vmax.xlane.f32.xlu2 %v325_v28  ;;  %v1974_v30 = vpop.f32.mrf.mxu2  ;;  %v700_v31 = vsel %vm315_vm15, %v1970_v27, -inf }
 0x2bc   :  { %701 = vmax.xlane.f32.xlu0 %v700_v31  ;;  %v514_v19 = vsel %vm315_vm15, %v1974_v30, -inf }
 0x2c2   :  { %v1978_v32 = vpop.f32.mrf.mxu1 }
 0x2c3   :  { %515 = vmax.xlane.f32.xlu2 %v514_v19  ;;  %v1982_v33 = vpop.f32.mrf.mxu2  ;;  %v703_v34 = vsel %vm315_vm15, %v1978_v32, -inf }
 0x2c4   :  { %704 = vmax.xlane.f32.xlu1 %v703_v34  ;;  %v517_v35 = vsel %vm315_vm15, %v1982_v33, -inf }
 0x2c5   :  { %518 = vmax.xlane.f32.xlu0 %v517_v35 }
 0x2ca   :  { %v1988_v36 = vpop.f32.mrf.mxu1 }
 0x2cb   :  { %v892_v37 = vsel %vm315_vm15, %v1988_v36, -inf }
 0x2cc   :  { %893 = vmax.xlane.f32.xlu2 %v892_v37 }
 0x2d2   :  { %v1992_v29 = vpop.f32.mrf.mxu1 }
 0x2d3   :  { %v895_v38 = vsel %vm315_vm15, %v1992_v29, -inf }
 0x2d4   :  { %896 = vmax.xlane.f32.xlu2 %v895_v38 }
 0x2d7   :  { %v1996_v41 = vpop.f32.mrf.mxu2 }
 0x2d8   :  { %v706_v42 = vsel %vm315_vm15, %v1996_v41, -inf }
 0x2d9   :  { %707 = vmax.xlane.f32.xlu0 %v706_v42 }
 0x2df   :  { %v2000_v43 = vpop.f32.mrf.mxu2 }
 0x2e0   :  { %v709_v44 = vsel %vm315_vm15, %v2000_v43, -inf }
 0x2e1   :  { %710 = vmax.xlane.f32.xlu2 %v709_v44 }
 0x2e7   :  { %v2004_v45 = vpop.f32.mrf.mxu2 }
 0x2e8   :  { %v898_v46 = vsel %vm315_vm15, %v2004_v45, -inf }
 0x2e9   :  { %899 = vmax.xlane.f32.xlu2 %v898_v46 }
 0x2ef   :  { %v2008_v47 = vpop.f32.mrf.mxu2 }
 0x2f0   :  { %v901_v48 = vsel %vm315_vm15, %v2008_v47, -inf }
 0x2f1   :  { %902 = vmax.xlane.f32.xlu0 %v901_v48 }
 0x30d   :  { %v318_v49 = vpop.xlane.xlu0 %317 }
 0x30e   :  { %v328_v50 = vsub.f32 %v272_v15, %v318_v49 }
 0x310   :  { %v332_v51 = vmul.f32 1.442695, %v328_v50 }
 0x312   :  { %1580 = vpow2.f32 %v332_v51 }
 0x315   :  { %v321_v52 = vpop.xlane.xlu1 %320 }
 0x316   :  { %v329_v53 = vsub.f32 %v275_v17, %v321_v52 }
 0x318   :  { %v2012_v54 = vpop.eup %1580  ;;  %v334_v55 = vmul.f32 1.442695, %v329_v53  ;;  %v324_v56 = vpop.xlane.xlu0 %323 }
 0x319   :  { %v330_v57 = vsub.f32 %v309_v20, %v324_v56  ;;  %v340_v58 = vsel %vm315_vm15, %v2012_v54, 0.0 }
 0x31a   :  { %1582 = vpow2.f32 %v334_v55  ;;  %341 = vadd.xlane.f32.xlu0 %v340_v58 }
 0x31b   :  { %v336_v59 = vmul.f32 1.442695, %v330_v57 }
 0x31d   :  { %1584 = vpow2.f32 %v336_v59 }
 0x31e   :  { %v510_v60 = vpop.xlane.xlu1 %509 }
 0x31f   :  { %v520_v61 = vsub.f32 %v463_v22, %v510_v60 }
 0x320   :  { %v2016_v62 = vpop.eup %1582 }
 0x321   :  { %v524_v63 = vmul.f32 1.442695, %v520_v61  ;;  %v343_v0 = vsel %vm315_vm15, %v2016_v62, 0.0 }
 0x322   :  { %344 = vadd.xlane.f32.xlu2 %v343_v0 }
 0x323   :  { %v2020_v1 = vpop.eup %1584  ;;  %1586 = vpow2.f32 %v524_v63 }
 0x324   :  { %v346_v2 = vsel %vm315_vm15, %v2020_v1, 0.0 }
 0x325   :  { %347 = vadd.xlane.f32.xlu1 %v346_v2 }
 0x326   :  { %v513_v3 = vpop.xlane.xlu2 %512 }
 0x329   :  { %v2024_v4 = vpop.eup %1586 }
 0x32a   :  { %v532_v5 = vsel %vm315_vm15, %v2024_v4, 0.0 }
 0x32b   :  { %533 = vadd.xlane.f32.xlu0 %v532_v5 }
 0x32e   :  { %v327_v6 = vpop.xlane.xlu2 %326 }
 0x32f   :  { %v331_v7 = vsub.f32 %v1968_v26, %v327_v6  ;;  %v702_v8 = vpop.xlane.xlu0 %701  ;;  %v521_v26 = vsub.f32 %v1964_v24, %v513_v3 }
 0x330   :  { %v712_v10 = vsub.f32 %v1970_v27, %v702_v8 }
 0x331   :  { %v338_v9 = vmul.f32 1.442695, %v331_v7  ;;  %v526_v28 = vmul.f32 1.442695, %v521_v26 }
 0x332   :  { %v716_v11 = vmul.f32 1.442695, %v712_v10 }
 0x333   :  { %1588 = vpow2.f32 %v338_v9 }
 0x334   :  { %1590 = vpow2.f32 %v716_v11 }
 0x336   :  { %v516_v23 = vpop.xlane.xlu2 %515 }
 0x337   :  { %v705_v12 = vpop.xlane.xlu1 %704  ;;  %v522_v31 = vsub.f32 %v1974_v30, %v516_v23 }
 0x338   :  { %v713_v13 = vsub.f32 %v1978_v32, %v705_v12 }
 0x339   :  { %v2031_v15 = vpop.eup %1588  ;;  %v528_v19 = vmul.f32 1.442695, %v522_v31 }
 0x33a   :  { %v718_v16 = vmul.f32 1.442695, %v713_v13  ;;  %v349_v17 = vsel %vm315_vm15, %v2031_v15, 0.0  ;;  %v2037_v18 = vpop.eup %1590 }
 0x33b   :  { %350 = vadd.xlane.f32.xlu0 %v349_v17  ;;  %v724_v21 = vsel %vm315_vm15, %v2037_v18, 0.0 }
 0x33c   :  { %1592 = vpow2.f32 %v718_v16 }
 0x33d   :  { %1594 = vpow2.f32 %v526_v28 }
 0x33e   :  { %1538 = vrot.lane.b32.xlu1 %v1923_v40, %s1764_s27  ;;  %1596 = vpow2.f32 %v528_v19 }
 0x33f   :  { %v894_v25 = vpop.xlane.xlu2 %893 }
 0x340   :  { %v904_v24 = vsub.f32 %v1988_v36, %v894_v25 }
 0x342   :  { %v2039_v20 = vpop.eup %1592  ;;  %v908_v37 = vmul.f32 1.442695, %v904_v24 }
 0x343   :  { %725 = vadd.xlane.f32.xlu0 %v724_v21  ;;  %v727_v22 = vsel %vm315_vm15, %v2039_v20, 0.0  ;;  %v2053_v34 = vpop.eup %1594 }
 0x344   :  { %728 = vadd.xlane.f32.xlu2 %v727_v22  ;;  %v535_v35 = vsel %vm315_vm15, %v2053_v34, 0.0  ;;  %v2058_v42 = vpop.eup %1596  ;;  %1598 = vpow2.f32 %v908_v37 }
 0x345   :  { %v538_v46 = vsel %vm315_vm15, %v2058_v42, 0.0 }
 0x347   :  { %v897_v27 = vpop.xlane.xlu2 %896 }
 0x348   :  { %v905_v50 = vsub.f32 %v1992_v29, %v897_v27 }
 0x34a   :  { %v2065_v51 = vpop.eup %1598  ;;  %v910_v52 = vmul.f32 1.442695, %v905_v50 }
 0x354   :  { %v2051_v32 = vpop.xlane.xlu2 %710 }
 0x357   :  { %1548 = vrot.lane.b32.xlu0 %v1923_v40, %s1765_s28  ;;  %v519_v40 = vpop.xlane.xlu0 %518 }
 0x358   :  { %v523_v44 = vsub.f32 %v1982_v33, %v519_v40 }
 0x35a   :  { %v530_v49 = vmul.f32 1.442695, %v523_v44 }
 0x35c   :  { %1543 = vrot.lane.b32.xlu2 %v1920_v39, %s1763_s26  ;;  %v900_v38 = vpop.xlane.xlu2 %899 }
 0x35d   :  { %v906_v30 = vsub.f32 %v2004_v45, %v900_v38  ;;  %v916_v45 = vsel %vm315_vm15, %v2065_v51, 0.0 }
 0x35f   :  { %v708_v48 = vpop.xlane.xlu0 %707  ;;  %v912_v36 = vmul.f32 1.442695, %v906_v30 }
 0x360   :  { %v714_v53 = vsub.f32 %v1996_v41, %v708_v48 }
 0x361   :  { %1600 = vpow2.f32 %v912_v36 }
 0x362   :  { %1602 = vpow2.f32 %v530_v49  ;;  %v720_v55 = vmul.f32 1.442695, %v714_v53 }
 0x363   :  { %1604 = vpow2.f32 %v910_v52 }
 0x364   :  { %1606 = vpow2.f32 %v720_v55 }
 0x367   :  { %v903_v33 = vpop.xlane.xlu0 %902  ;;  %v2071_v57 = vpop.eup %1600 }
 0x368   :  { %536 = vadd.xlane.f32.xlu1 %v535_v35  ;;  %v907_v56 = vsub.f32 %v2008_v47, %v903_v33  ;;  %v2073_v58 = vpop.eup %1602  ;;  %v922_v59 = vsel %vm315_vm15, %v2071_v57, 0.0 }
 0x369   :  { %v541_v41 = vsel %vm315_vm15, %v2073_v58, 0.0  ;;  %v2079_v60 = vpop.eup %1604 }
 0x36a   :  { %v914_v29 = vmul.f32 1.442695, %v907_v56  ;;  %v919_v47 = vsel %vm315_vm15, %v2079_v60, 0.0  ;;  %v2083_v61 = vpop.eup %1606 }
 0x36b   :  { %v730_v63 = vsel %vm315_vm15, %v2083_v61, 0.0 }
 0x36c   :  { %1608 = vpow2.f32 %v914_v29 }
 0x370   :  { %539 = vadd.xlane.f32.xlu1 %v538_v46 }
 0x372   :  { %v2087_v0 = vpop.eup %1608 }
 0x373   :  { %v925_v2 = vsel %vm315_vm15, %v2087_v0, 0.0 }
 0x378   :  { %917 = vadd.xlane.f32.xlu1 %v916_v45 }
 0x380   :  { %923 = vadd.xlane.f32.xlu1 %v922_v59 }
 0x381   :  { %542 = vadd.xlane.f32.xlu0 %v541_v41 }
 0x385   :  { %920 = vadd.xlane.f32.xlu2 %v919_v47 }
 0x389   :  { %731 = vadd.xlane.f32.xlu0 %v730_v63 }
 0x38d   :  { %926 = vadd.xlane.f32.xlu2 %v925_v2  ;;  %v342_v3 = vpop.xlane.xlu0 %341 }
 0x38e   :  { %1610 = vrcp.f32 %v342_v3 }
 0x394   :  { %v1611_v5 = vpop.eup %1610 }
 0x395   :  { %v345_v6 = vpop.xlane.xlu2 %344  ;;  %v356_v7 = vmul.f32 %v1611_v5, %v2012_v54 }
 0x396   :  { %1612 = vrcp.f32 %v345_v6 }
 0x397   :  { %1447 = vmatmul.msk.f32.vlgmr.msrb.gmra.mxu0 %vm315_vm15, %v356_v7 }
 0x398   :  { %v348_v8 = vpop.xlane.xlu1 %347 }
 0x399   :  { %1614 = vrcp.f32 %v348_v8  ;;  %1558 = vrot.lane.b32.xlu1 %v1920_v39, %s1765_s28 }
 0x39c   :  { %v1613_v9 = vpop.eup %1612 }
 0x39d   :  { %1553 = vrot.lane.b32.xlu0 %v1920_v39, %s1764_s27  ;;  %v357_v10 = vmul.f32 %v1613_v9, %v2016_v62  ;;  %v715_v39 = vsub.f32 %v2000_v43, %v2051_v32 }
 0x39e   :  { %v534_v54 = vpop.xlane.xlu0 %533 }
 0x39f   :  { %v1615_v11 = vpop.eup %1614  ;;  %1448 = vmatmul.msk.f32.gmra.mxu0 %vm315_vm15, %v357_v10 }
 0x3a0   :  { %v358_v12 = vmul.f32 %v1615_v11, %v2020_v1  ;;  %v722_v1 = vmul.f32 1.442695, %v715_v39 }
 0x3a2   :  { %1449 = vmatmul.msk.f32.vlgmr.msra.gmra.mxu3 %vm315_vm15, %v358_v12 }
 0x3ae   :  { %v351_v13 = vpop.xlane.xlu0 %350 }
 0x3af   :  { %1616 = vrcp.f32 %v351_v13 }
 0x3b0   :  { %v1539_v16 = vpop.permute.xlu1 %1538  ;;  %1618 = vrcp.f32 %v534_v54 }
 0x3b1   :  { %v1540_v17 = vunpack.i.l.bf16 %v1539_v16  ;;  %v1541_v21 = vunpack.i.h.bf16 %v1539_v16  ;;  %1620 = vpow2.f32 %v722_v1 }
 0x3b3   :  { %770 = vmatpush.msra.mxu3 %v1540_v17 }
 0x3b5   :  { %v1617_v22 = vpop.eup %1616  ;;  %771 = vmatpush.msra.mxu3 %v1541_v21 }
 0x3b6   :  { %v359_v62 = vmul.f32 %v1617_v22, %v2031_v15  ;;  %v1619_v25 = vpop.eup %1618  ;;  %v726_v31 = vpop.xlane.xlu0 %725 }
 0x3b7   :  { %v729_v23 = vpop.xlane.xlu2 %728  ;;  %v548_v26 = vmul.f32 %v1619_v25, %v2024_v4  ;;  %v2107_v43 = vpop.eup %1620  ;;  %v1070_v25 = vld [vmem:[%s2291_s5 + $0x18] sm:$0xff] }
 0x3b8   :  { %1450 = vmatmul.msk.f32.gmra.mxu3 %vm315_vm15, %v359_v62  ;;  %v733_v15 = vsel %vm315_vm15, %v2107_v43, 0.0  ;;  %1099 = vmatpush.msra.mxu1 %v1070_v25 }
 0x3bf   :  { %v1544_v27 = vpop.permute.xlu2 %1543 }
 0x3c0   :  { %v1545_v28 = vunpack.i.l.bf16 %v1544_v27  ;;  %1459 = vmatmul.msk.f32.vlgmr.msrb.gmra.mxu3 %vm315_vm15, %v548_v26  ;;  %v1546_v19 = vunpack.i.h.bf16 %v1544_v27  ;;  %v1069_v26 = vld [vmem:[%s2291_s5 + $0x10] sm:$0xff]  ;;  %v1068_v27 = vld [vmem:[%s2291_s5 + $0x8] sm:$0xff] }
 0x3c1   :  { %1100 = vmatpush.msra.mxu1 %v1069_v26 }
 0x3c2   :  { %613 = vmatpush.msra.mxu0 %v1545_v28 }
 0x3c3   :  { %1101 = vmatpush.msra.mxu1 %v1068_v27 }
 0x3c4   :  { %614 = vmatpush.msra.mxu0 %v1546_v19 }
 0x3c7   :  { %734 = vadd.xlane.f32.xlu0 %v733_v15 }
 0x3c9   :  { %v1549_v32 = vpop.permute.xlu0 %1548 }
 0x3ca   :  { %v1550_v24 = vunpack.i.l.bf16 %v1549_v32  ;;  %v1551_v35 = vunpack.i.h.bf16 %v1549_v32 }
 0x3cc   :  { %962 = vmatpush.msrb.mxu3 %v1550_v24 }
 0x3ce   :  { %963 = vmatpush.msrb.mxu3 %v1551_v35 }
 0x3db   :  { %v537_v4 = vpop.xlane.xlu1 %536 }
 0x3dc   :  { %1622 = vrcp.f32 %v537_v4 }
 0x3dd   :  { %1624 = vrcp.f32 %v726_v31  ;;  %v1067_v31 = vld [vmem:[%s2291_s5] sm:$0xff] }
 0x3de   :  { %1102 = vmatpush.msra.mxu1 %v1067_v31 }
 0x3e2   :  { %v1623_v40 = vpop.eup %1622 }
 0x3e3   :  { %v540_v37 = vpop.xlane.xlu1 %539  ;;  %v549_v38 = vmul.f32 %v1623_v40, %v2053_v34  ;;  %v1625_v30 = vpop.eup %1624 }
 0x3e4   :  { %1626 = vrcp.f32 %v540_v37  ;;  %v740_v46 = vmul.f32 %v1625_v30, %v2037_v18 }
 0x3e5   :  { %1460 = vmatmul.msk.f32.gmra.mxu3 %vm315_vm15, %v549_v38  ;;  %1628 = vrcp.f32 %v729_v23 }
 0x3ea   :  { %v1627_v44 = vpop.eup %1626 }
 0x3eb   :  { %v550_v48 = vmul.f32 %v1627_v44, %v2058_v42  ;;  %v918_v36 = vpop.xlane.xlu1 %917  ;;  %v1629_v49 = vpop.eup %1628 }
 0x3ec   :  { %1630 = vrcp.f32 %v918_v36  ;;  %v741_v50 = vmul.f32 %v1629_v49, %v2039_v20 }
 0x3ed   :  { %1461 = vmatmul.msk.f32.vlgmr.msra.gmra.mxu0 %vm315_vm15, %v550_v48  ;;  %1471 = vmatmul.msk.f32.vlgmr.msra.gmra.mxu3 %vm315_vm15, %v740_v46 }
 0x3f2   :  { %v1631_v52 = vpop.eup %1630 }
 0x3f3   :  { %v932_v18 = vmul.f32 %v1631_v52, %v2065_v51  ;;  %v924_v56 = vpop.xlane.xlu1 %923 }
 0x3f4   :  { %v543_v34 = vpop.xlane.xlu0 %542 }
 0x3f5   :  { %1632 = vrcp.f32 %v543_v34  ;;  %1472 = vmatmul.msk.f32.gmra.mxu3 %vm315_vm15, %v741_v50 }
 0x3f8   :  { %v921_v53 = vpop.xlane.xlu2 %920 }
 0x3f9   :  { %1634 = vrcp.f32 %v921_v53 }
 0x3fb   :  { %v1633_v45 = vpop.eup %1632 }
 0x3fc   :  { %v551_v42 = vmul.f32 %v1633_v45, %v2073_v58  ;;  %v732_v20 = vpop.xlane.xlu0 %731 }
 0x3fd   :  { %1483 = vmatmul.msk.f32.vlgmr.msrb.gmra.mxu3 %vm315_vm15, %v932_v18  ;;  %1636 = vrcp.f32 %v732_v20 }
 0x3fe   :  { %1462 = vmatmul.msk.f32.gmra.mxu0 %vm315_vm15, %v551_v42 }
 0x3ff   :  { %v1635_v33 = vpop.eup %1634 }
 0x400   :  { %v933_v55 = vmul.f32 %v1635_v33, %v2079_v60 }
 0x403   :  { %v1637_v59 = vpop.eup %1636 }
 0x404   :  { %v742_v51 = vmul.f32 %v1637_v59, %v2083_v61  ;;  %v927_v61 = vpop.xlane.xlu2 %926 }
 0x405   :  { %1484 = vmatmul.msk.f32.gmra.mxu3 %vm315_vm15, %v933_v55  ;;  %v1565_v55 = vld [vmem:[%s2292_s6] ss:$0 sm:$0xff] }
 0x40b   :  { %v1559_v47 = vpop.permute.xlu1 %1558 }
 0x40c   :  { %v1560_v58 = vunpack.i.l.bf16 %v1559_v47  ;;  %v1561_v2 = vunpack.i.h.bf16 %v1559_v47 }
 0x40f   :  { %v1554_v29 = vpop.permute.xlu0 %1553 }
 0x410   :  { %v1555_v41 = vunpack.i.l.bf16 %v1554_v29  ;;  %v1556_v63 = vunpack.i.h.bf16 %v1554_v29  ;;  %v1668_v29 = vld [vmem:[%s2286_s0] sm:$0xff] }
 0x412   :  { %805 = vmatpush.msrb.mxu0 %v1555_v41 }
 0x414   :  { %806 = vmatpush.msrb.mxu0 %v1556_v63  ;;  %v389_v13 = vpop.f32.mrf.mxu0 }
 0x415   :  { %1473 = vmatmul.msk.f32.vlgmr.msrb.gmra.mxu0 %vm315_vm15, %v742_v51  ;;  %v1669_v51 = vld [vmem:[%s2286_s0 + $0x8] sm:$0xff] }
 0x416   :  { %997 = vmatpush.msra.mxu0 %v1560_v58 }
 0x418   :  { %998 = vmatpush.msra.mxu0 %v1561_v2 }
 0x41c   :  { %v392_v21 = vpop.f32.mrf.mxu0 }
 0x425   :  { %v2127_v60 = vpop.f32.mrf.mxu3 }
 0x43a   :  { %v735_v3 = vpop.xlane.xlu0 %734 }
 0x43b   :  { %1638 = vrcp.f32 %v735_v3  ;;  %v2129_v5 = vpop.f32.mrf.mxu3 }
 0x43c   :  { %1640 = vrcp.f32 %v924_v56 }
 0x43d   :  { %1642 = vrcp.f32 %v927_v61 }
 0x441   :  { %v1639_v6 = vpop.eup %1638 }
 0x442   :  { %v743_v7 = vmul.f32 %v1639_v6, %v2107_v43  ;;  %v1641_v9 = vpop.eup %1640 }
 0x443   :  { %v581_v8 = vpop.f32.mrf.mxu3  ;;  %v934_v10 = vmul.f32 %v1641_v9, %v2071_v57  ;;  %v1643_v11 = vpop.eup %1642  ;;  %v1671_v9 = vld [vmem:[%s2286_s0 + $0x18] sm:$0xff] }
 0x444   :  { %1010 = vrot.lane.b32.xlu2 %v581_v8, %s1753_s19  ;;  %1474 = vmatmul.msk.f32.gmra.mxu0 %vm315_vm15, %v743_v7  ;;  %v935_v12 = vmul.f32 %v1643_v11, %v2087_v0 }
 0x44c   :  { %1485 = vmatmul.msk.f32.vlgmr.msra.gmra.mxu0 %vm315_vm15, %v934_v10 }
 0x454   :  { %1486 = vmatmul.msk.f32.gmra.mxu0 %vm315_vm15, %v935_v12 }
 0x468   :  { %v584_v54 = vpop.f32.mrf.mxu3 }
 0x46a   :  { %v616_v57 = vpop.f32.mrf.mxu0 }
 0x470   :  { %v773_v16 = vpop.f32.mrf.mxu3 }
 0x471   :  { %1026 = vrot.lane.b32.xlu1 %v773_v16, %s1766_s29 }
 0x478   :  { %v776_v17 = vpop.f32.mrf.mxu3 }
 0x479   :  { %1012 = vrot.lane.b32.xlu1 %v584_v54, %s1753_s19 }
 0x47b   :  { %v619_v0 = vpop.f32.mrf.mxu0 }
 0x480   :  { %v965_v22 = vpop.f32.mrf.mxu3 }
 0x481   :  { %1028 = vrot.lane.b32.xlu1 %v776_v17, %s1766_s29  ;;  %1042 = vrot.lane.b32.xlu0 %v965_v22, %s1767_s30 }
 0x488   :  { %v968_v39 = vpop.f32.mrf.mxu3 }
 0x489   :  { %1044 = vrot.lane.b32.xlu2 %v968_v39, %s1767_s30  ;;  %1014 = vrot.lane.b32.xlu1 %v616_v57, %s1753_s19 }
 0x491   :  { %1016 = vrot.lane.b32.xlu1 %v619_v0, %s1753_s19 }
 0x492   :  { %v808_v62 = vpop.f32.mrf.mxu0 }
 0x493   :  { %1030 = vrot.lane.b32.xlu2 %v808_v62, %s1766_s29 }
 0x49e   :  { %v1011_v15 = vpop.permute.xlu2 %1010 }
 0x49f   :  { %v1054_v32 = vsel %vm246_vm14, %v389_v13, %v1011_v15  ;;  %v1227_v15 = vld [vmem:[#allocation5 + $0x18] sm:$0xff] }
 0x4a0   :  { %1256 = vmatpush.msra.mxu2 %v1227_v15  ;;  %v1359_v15 = vld [vmem:[%s2297_s11 + $0x30] sm:$0xff] }
 0x4c1   :  { %v811_v23 = vpop.f32.mrf.mxu0 }
 0x4c2   :  { %1032 = vrot.lane.b32.xlu2 %v811_v23, %s1766_s29 }
 0x4c9   :  { %v1000_v1 = vpop.f32.mrf.mxu0 }
 0x4ca   :  { %1046 = vrot.lane.b32.xlu0 %v1000_v1, %s1767_s30 }
 0x4d1   :  { %v1003_v28 = vpop.f32.mrf.mxu0 }
 0x4d2   :  { %1048 = vrot.lane.b32.xlu0 %v1003_v28, %s1767_s30 }
 0x4e3   :  { %v1027_v19 = vpop.permute.xlu1 %1026  ;;  %v1045_v30 = vpop.permute.xlu2 %1044 }
 0x4e4   :  { %v1058_v24 = vsel %vm315_vm15, %v1054_v32, %v1027_v19  ;;  %v1226_v32 = vld [vmem:[#allocation5 + $0x10] sm:$0xff] }
 0x4e5   :  { %1257 = vmatpush.msra.mxu2 %v1226_v32  ;;  %v1358_v32 = vld [vmem:[%s2297_s11 + $0x28] sm:$0xff] }
 0x4eb   :  { %v1013_v43 = vpop.permute.xlu1 %1012 }
 0x4ec   :  { %v1055_v37 = vsel %vm246_vm14, %v392_v21, %v1013_v43 }
 0x4ed   :  { %v1031_v48 = vpop.permute.xlu2 %1030 }
 0x4f3   :  { %v1043_v35 = vpop.permute.xlu0 %1042  ;;  %v1029_v40 = vpop.permute.xlu1 %1028 }
 0x4f4   :  { %v1063_v4 = vsel %vm1062_vm1, %v1058_v24, %v1043_v35  ;;  %v1059_v38 = vsel %vm315_vm15, %v1055_v37, %v1029_v40  ;;  %v1225_v24 = vld [vmem:[#allocation5 + $0x8] sm:$0xff]  ;;  %v1224_v35 = vld [vmem:[#allocation5] sm:$0xff] }
 0x4f5   :  { %1487 = vmatmul.msk.f32.vlgmr.msra.gmra.mxu1 %vm79_vm0, %v1063_v4  ;;  %v1064_v44 = vsel %vm1062_vm1, %v1059_v38, %v1045_v30  ;;  %1258 = vmatpush.msra.mxu2 %v1225_v24  ;;  %v1356_v24 = vld [vmem:[%s2297_s11 + $0x18] sm:$0xff] }
 0x4f7   :  { %1259 = vmatpush.msra.mxu2 %v1224_v35  ;;  %v1355_v35 = vld [vmem:[%s2297_s11 + $0x10] sm:$0xff] }
 0x4fb   :  { %v1015_v46 = vpop.permute.xlu1 %1014 }
 0x4fc   :  { %v1056_v36 = vsel %vm246_vm14, %v2127_v60, %v1015_v46 }
 0x4fd   :  { %1488 = vmatmul.msk.f32.gmra.mxu1 %vm79_vm0, %v1064_v44  ;;  %v1060_v50 = vsel %vm315_vm15, %v1056_v36, %v1031_v48 }
 0x503   :  { %v1017_v52 = vpop.permute.xlu1 %1016 }
 0x504   :  { %v1057_v45 = vsel %vm246_vm14, %v2129_v5, %v1017_v52  ;;  %v1670_v5 = vld [vmem:[%s2286_s0 + $0x10] sm:$0xff]  ;;  %s1421_s0 = sshll.u32 %s2299_s13, 4  ;;  %s1422_s0 = int_to_ptr.hbm [resolvable:$true] %s1421_s0 }
 0x51c   :  { %v1033_v53 = vpop.permute.xlu2 %1032 }
 0x51d   :  { %v1061_v18 = vsel %vm315_vm15, %v1057_v45, %v1033_v53  ;;  %v1566_v45 = vld [vmem:[%s2293_s7] ss:$0 sm:$0xff] }
 0x53c   :  { %v1047_v49 = vpop.permute.xlu0 %1046 }
 0x53d   :  { %v1065_v34 = vsel %vm1062_vm1, %v1060_v50, %v1047_v49 }
 0x53e   :  { %1489 = vmatmul.msk.f32.gmra.mxu1 %vm79_vm0, %v1065_v34 }
 0x544   :  { %v1049_v42 = vpop.permute.xlu0 %1048 }
 0x545   :  { %v1066_v33 = vsel %vm1062_vm1, %v1061_v18, %v1049_v42 }
 0x546   :  { %1490 = vmatmul.msk.f32.gmra.mxu1 %vm79_vm0, %v1066_v33 }
 0x572   :  { %v1104_v20 = vpop.f32.mrf.mxu1 }
 0x573   :  { %v1105_v56 = vadd.f32 %v1565_v55, %v1104_v20 }
 0x575   :  { %v2177_v59 = vadd.f32 %v1668_v29, %v1105_v56 }
 0x577   :  { %v1120_v41 = vsel %vm79_vm0, %v2177_v59, 0.0 }
 0x578   :  { %1121 = vadd.xlane.f32.xlu1 %v1120_v41 }
 0x57a   :  { %v1107_v47 = vpop.f32.mrf.mxu1 }
 0x57b   :  { %v1108_v63 = vadd.f32 %v1565_v55, %v1107_v47 }
 0x57d   :  { %v2184_v58 = vadd.f32 %v1669_v51, %v1108_v63 }
 0x57f   :  { %v1123_v2 = vsel %vm79_vm0, %v2184_v58, 0.0 }
 0x580   :  { %1124 = vadd.xlane.f32.xlu2 %v1123_v2 }
 0x5bb   :  { %v1110_v60 = vpop.f32.mrf.mxu1 }
 0x5bc   :  { %v1111_v3 = vadd.f32 %v1565_v55, %v1110_v60 }
 0x5be   :  { %v2191_v6 = vadd.f32 %v1670_v5, %v1111_v3 }
 0x5c0   :  { %v1126_v7 = vsel %vm79_vm0, %v2191_v6, 0.0 }
 0x5c1   :  { %1127 = vadd.xlane.f32.xlu0 %v1126_v7 }
 0x5c3   :  { %v1113_v8 = vpop.f32.mrf.mxu1 }
 0x5c4   :  { %v1114_v61 = vadd.f32 %v1565_v55, %v1113_v8  ;;  %v1567_v55 = vld [vmem:[%s2294_s8] ss:$0 sm:$0xff] }
 0x5c6   :  { %v2198_v10 = vadd.f32 %v1671_v9, %v1114_v61 }
 0x5c8   :  { %v1129_v11 = vsel %vm79_vm0, %v2198_v10, 0.0 }
 0x5c9   :  { %1130 = vadd.xlane.f32.xlu1 %v1129_v11 }
 0x5eb   :  { %v1122_v12 = vpop.xlane.xlu1 %1121 }
 0x5ec   :  { %v1132_v54 = vmul.f32 %v1122_v12, %v1864_v14 }
 0x5ee   :  { %v1136_v13 = vsub.f32 %v2177_v59, %v1132_v54 }
 0x5f0   :  { %v1140_v16 = vmul.f32 %v1136_v13, %v1136_v13 }
 0x5f2   :  { %v1144_v17 = vsel %vm79_vm0, %v1140_v16, 0.0 }
 0x5f3   :  { %1145 = vadd.xlane.f32.xlu2 %v1144_v17  ;;  %v1125_v21 = vpop.xlane.xlu2 %1124 }
 0x5f4   :  { %v1133_v22 = vmul.f32 %v1125_v21, %v1864_v14 }
 0x5f6   :  { %v1137_v57 = vsub.f32 %v2184_v58, %v1133_v22 }
 0x5f8   :  { %v1141_v39 = vmul.f32 %v1137_v57, %v1137_v57 }
 0x5fa   :  { %v1147_v0 = vsel %vm79_vm0, %v1141_v39, 0.0 }
 0x5fb   :  { %1148 = vadd.xlane.f32.xlu0 %v1147_v0 }
 0x634   :  { %v1128_v62 = vpop.xlane.xlu0 %1127 }
 0x635   :  { %v1134_v23 = vmul.f32 %v1128_v62, %v1864_v14 }
 0x637   :  { %v2210_v1 = vsub.f32 %v2191_v6, %v1134_v23 }
 0x639   :  { %v1142_v25 = vmul.f32 %v2210_v1, %v2210_v1 }
 0x63b   :  { %v1150_v26 = vsel %vm79_vm0, %v1142_v25, 0.0 }
 0x63c   :  { %v1131_v27 = vpop.xlane.xlu1 %1130  ;;  %1151 = vadd.xlane.f32.xlu1 %v1150_v26 }
 0x63d   :  { %v1135_v28 = vmul.f32 %v1131_v27, %v1864_v14 }
 0x63f   :  { %v2217_v31 = vsub.f32 %v2198_v10, %v1135_v28 }
 0x641   :  { %v1143_v19 = vmul.f32 %v2217_v31, %v2217_v31 }
 0x643   :  { %v1153_v43 = vsel %vm79_vm0, %v1143_v19, 0.0 }
 0x644   :  { %1154 = vadd.xlane.f32.xlu2 %v1153_v43 }
 0x666   :  { %v1146_v4 = vpop.xlane.xlu2 %1145 }
 0x667   :  { %v1156_v40 = vmul.f32 %v1146_v4, %v1864_v14  ;;  %v1568_v4 = vld [vmem:[%s2296_s10] ss:$0 sm:$0xff] }
 0x669   :  { %v1160_v37 = vadd.f32 1e-05, %v1156_v40  ;;  %v1354_v40 = vld [vmem:[%s2297_s11 + $0x8] sm:$0xff] }
 0x66b   :  { %1644 = vrsqrt.f32 %v1160_v37  ;;  %vm1170_vm3 = vweird.f32 %v1160_v37 }
 0x66e   :  { %v1149_v38 = vpop.xlane.xlu0 %1148 }
 0x66f   :  { %v1157_v30 = vmul.f32 %v1149_v38, %v1864_v14  ;;  %v1353_v38 = vld [vmem:[%s2297_s11] sm:$0xff] }
 0x671   :  { %v1645_v44 = vpop.eup %1644  ;;  %v1161_v46 = vadd.f32 1e-05, %v1157_v30 }
 0x672   :  { %v1165_v48 = vmul.f32 %v1645_v44, %v1160_v37  ;;  %vm1171_vm2 = vweird.f32 %v1645_v44 }
 0x673   :  { %1646 = vrsqrt.f32 %v1161_v46  ;;  %vm1172_vm4 = vmor %vm1170_vm3, %vm1171_vm2  ;;  %vm1180_vm6 = vweird.f32 %v1161_v46  ;;  %vm1365_vm3 = vcmask 523264  }
 0x674   :  { %v1166_v36 = vmul.f32 %v1645_v44, %v1165_v48 }
 0x676   :  { %v1167_v49 = vmul.f32 0.5, %v1166_v36 }
 0x678   :  { %v1168_v50 = vsub.f32 1.5, %v1167_v49 }
 0x679   :  { %v1647_v34 = vpop.eup %1646 }
 0x67a   :  { %v1169_v52 = vmul.f32 %v1645_v44, %v1168_v50  ;;  %v1175_v53 = vmul.f32 %v1647_v34, %v1161_v46  ;;  %vm1181_vm5 = vweird.f32 %v1647_v34 }
 0x67b   :  { %vm1182_vm7 = vmor %vm1180_vm6, %vm1181_vm5 }
 0x67c   :  { %v1173_v18 = vsel %vm1172_vm4, %v1645_v44, %v1169_v52  ;;  %v1176_v42 = vmul.f32 %v1647_v34, %v1175_v53 }
 0x67d   :  { %v1204_v33 = vmul.f32 %v1173_v18, %v1136_v13 }
 0x67e   :  { %v1177_v20 = vmul.f32 0.5, %v1176_v42 }
 0x67f   :  { %v1212_v56 = vmul.f32 %v1566_v45, %v1204_v33 }
 0x680   :  { %v1178_v29 = vsub.f32 1.5, %v1177_v20 }
 0x681   :  { %v1220_v41 = vadd.f32 %v1567_v55, %v1212_v56 }
 0x682   :  { %v1179_v47 = vmul.f32 %v1647_v34, %v1178_v29 }
 0x683   :  { %1491 = vmatmul.msk.f32.vlgmr.msra.gmra.mxu2 %vm79_vm0, %v1220_v41 }
 0x684   :  { %v1183_v63 = vsel %vm1182_vm7, %v1647_v34, %v1179_v47 }
 0x685   :  { %v1205_v51 = vmul.f32 %v1183_v63, %v1137_v57 }
 0x687   :  { %v1213_v2 = vmul.f32 %v1566_v45, %v1205_v51 }
 0x689   :  { %v1221_v60 = vadd.f32 %v1567_v55, %v1213_v2 }
 0x68b   :  { %1492 = vmatmul.msk.f32.gmra.mxu2 %vm79_vm0, %v1221_v60 }
 0x6af   :  { %v1152_v3 = vpop.xlane.xlu1 %1151 }
 0x6b0   :  { %v1158_v5 = vmul.f32 %v1152_v3, %v1864_v14 }
 0x6b2   :  { %v1162_v7 = vadd.f32 1e-05, %v1158_v5 }
 0x6b4   :  { %1648 = vrsqrt.f32 %v1162_v7  ;;  %vm1190_vm9 = vweird.f32 %v1162_v7 }
 0x6b7   :  { %v1155_v8 = vpop.xlane.xlu2 %1154 }
 0x6b8   :  { %v1159_v61 = vmul.f32 %v1155_v8, %v1864_v14 }
 0x6ba   :  { %v1649_v9 = vpop.eup %1648  ;;  %v1163_v11 = vadd.f32 1e-05, %v1159_v61 }
 0x6bb   :  { %v1185_v12 = vmul.f32 %v1649_v9, %v1162_v7  ;;  %vm1191_vm8 = vweird.f32 %v1649_v9 }
 0x6bc   :  { %1650 = vrsqrt.f32 %v1163_v11  ;;  %vm1192_vm10 = vmor %vm1190_vm9, %vm1191_vm8  ;;  %vm1200_vm12 = vweird.f32 %v1163_v11 }
 0x6bd   :  { %v1186_v54 = vmul.f32 %v1649_v9, %v1185_v12 }
 0x6bf   :  { %v1187_v13 = vmul.f32 0.5, %v1186_v54 }
 0x6c1   :  { %v1188_v16 = vsub.f32 1.5, %v1187_v13 }
 0x6c2   :  { %v1651_v17 = vpop.eup %1650 }
 0x6c3   :  { %v1189_v21 = vmul.f32 %v1649_v9, %v1188_v16  ;;  %v1195_v22 = vmul.f32 %v1651_v17, %v1163_v11  ;;  %vm1201_vm11 = vweird.f32 %v1651_v17 }
 0x6c4   :  { %vm1202_vm13 = vmor %vm1200_vm12, %vm1201_vm11 }
 0x6c5   :  { %v1193_v57 = vsel %vm1192_vm10, %v1649_v9, %v1189_v21  ;;  %v1196_v39 = vmul.f32 %v1651_v17, %v1195_v22 }
 0x6c6   :  { %v1206_v0 = vmul.f32 %v1193_v57, %v2210_v1  ;;  %v1360_v1 = vld [vmem:[%s2297_s11 + $0x38] sm:$0xff] }
 0x6c7   :  { %v1197_v62 = vmul.f32 0.5, %v1196_v39  ;;  %1386 = vmatpush.msra.mxu3 %v1360_v1 }
 0x6c8   :  { %v1214_v23 = vmul.f32 %v1566_v45, %v1206_v0 }
 0x6c9   :  { %v1198_v14 = vsub.f32 1.5, %v1197_v62  ;;  %1387 = vmatpush.msra.mxu3 %v1359_v15 }
 0x6ca   :  { %v1222_v25 = vadd.f32 %v1567_v55, %v1214_v23 }
 0x6cb   :  { %v1199_v26 = vmul.f32 %v1651_v17, %v1198_v14  ;;  %1388 = vmatpush.msra.mxu3 %v1358_v32 }
 0x6cc   :  { %1493 = vmatmul.msk.f32.gmra.mxu2 %vm79_vm0, %v1222_v25 }
 0x6cd   :  { %v1203_v27 = vsel %vm1202_vm13, %v1651_v17, %v1199_v26 }
 0x6ce   :  { %v1207_v28 = vmul.f32 %v1203_v27, %v2217_v31  ;;  %v1357_v31 = vld [vmem:[%s2297_s11 + $0x20] sm:$0xff] }
 0x6cf   :  { %1389 = vmatpush.msra.mxu3 %v1357_v31 }
 0x6d0   :  { %v1215_v19 = vmul.f32 %v1566_v45, %v1207_v28 }
 0x6d1   :  { %1390 = vmatpush.msra.mxu3 %v1356_v24 }
 0x6d2   :  { %v1223_v43 = vadd.f32 %v1567_v55, %v1215_v19 }
 0x6d3   :  { %1391 = vmatpush.msra.mxu3 %v1355_v35 }
 0x6d4   :  { %1494 = vmatmul.msk.f32.gmra.mxu2 %vm79_vm0, %v1223_v43 }
 0x6d5   :  { %1392 = vmatpush.msra.mxu3 %v1354_v40 }
 0x6d7   :  { %1393 = vmatpush.msra.mxu3 %v1353_v38 }
 0x706   :  { %v1261_v37 = vpop.f32.mrf.mxu2 }
 0x707   :  { %v1262_v30 = vadd.f32 %v1568_v4, %v1261_v37 }
 0x709   :  { %v1495_v44 = vmul.f32 -1.442695, %v1262_v30 }
 0x70b   :  { %1652 = vpow2.f32 %v1495_v44 }
 0x70e   :  { %v1264_v46 = vpop.f32.mrf.mxu2 }
 0x70f   :  { %v1265_v48 = vadd.f32 %v1568_v4, %v1264_v46 }
 0x711   :  { %v1653_v36 = vpop.eup %1652  ;;  %v1496_v49 = vmul.f32 -1.442695, %v1265_v48 }
 0x712   :  { %v1285_v50 = vadd.f32 1.0, %v1653_v36 }
 0x713   :  { %1654 = vpow2.f32 %v1496_v49 }
 0x714   :  { %1656 = vrcp.f32 %v1285_v50  ;;  %v1300_v42 = vand.u32 2147483648, %v1285_v50  ;;  %v1298_v55 = vand.u32 2147483647, %v1285_v50  ;;  %vm1294_vm15 = vweird.f32 %v1285_v50 }
 0x716   :  { %v1301_v29 = vor.u32 1.1754944e-38, %v1300_v42  ;;  %vm1299_vm2 = vcmp.eq.f32.partialorder %v1298_v55, 8.507059e+37 }
 0x719   :  { %v1655_v34 = vpop.eup %1654 }
 0x71a   :  { %v1657_v52 = vpop.eup %1656  ;;  %v1286_v53 = vadd.f32 1.0, %v1655_v34 }
 0x71b   :  { %v1290_v45 = vmul.f32 %v1657_v52, %v1285_v50  ;;  %vm1295_vm14 = vweird.f32 %v1657_v52 }
 0x71c   :  { %1658 = vrcp.f32 %v1286_v53  ;;  %vm1296_vm1 = vmor %vm1294_vm15, %vm1295_vm14  ;;  %v1315_v60 = vand.u32 2147483648, %v1286_v53  ;;  %v1313_v5 = vand.u32 2147483647, %v1286_v53  ;;  %vm1309_vm5 = vweird.f32 %v1286_v53 }
 0x71d   :  { %v1291_v18 = vsub.f32 1.0, %v1290_v45 }
 0x71e   :  { %v1316_v8 = vor.u32 1.1754944e-38, %v1315_v60  ;;  %vm1314_vm7 = vcmp.eq.f32.partialorder %v1313_v5, 8.507059e+37 }
 0x71f   :  { %v1292_v33 = vmul.f32 %v1657_v52, %v1291_v18 }
 0x721   :  { %v1293_v20 = vadd.f32 %v1657_v52, %v1292_v33 }
 0x722   :  { %v1659_v56 = vpop.eup %1658 }
 0x723   :  { %v1297_v41 = vsel %vm1296_vm1, %v1657_v52, %v1293_v20  ;;  %v1305_v47 = vmul.f32 %v1659_v56, %v1286_v53  ;;  %vm1310_vm4 = vweird.f32 %v1659_v56 }
 0x724   :  { %v1302_v63 = vsel %vm1299_vm2, %v1301_v29, %v1297_v41  ;;  %vm1311_vm6 = vmor %vm1309_vm5, %vm1310_vm4 }
 0x725   :  { %v1349_v51 = vmul.f32 %v1302_v63, %v1262_v30  ;;  %v1306_v2 = vsub.f32 1.0, %v1305_v47 }
 0x727   :  { %v1307_v3 = vmul.f32 %v1659_v56, %v1306_v2  ;;  %1499 = vmatmul.msk.f32.vlgmr.msra.gmra.mxu3 %vm1365_vm3, %v1349_v51 }
 0x729   :  { %v1308_v7 = vadd.f32 %v1659_v56, %v1307_v3 }
 0x72b   :  { %v1312_v61 = vsel %vm1311_vm6, %v1659_v56, %v1308_v7 }
 0x72c   :  { %v1317_v9 = vsel %vm1314_vm7, %v1316_v8, %v1312_v61 }
 0x72d   :  { %v1350_v11 = vmul.f32 %v1317_v9, %v1265_v48  ;;  %v1569_v48 = vld [vmem:[%s2298_s12] ss:$0 sm:$0xff]  ;;  %s1768_s12 = smov [#allocation7]  }
 0x72e   :  { %s1419_s24 = sshll.u32 %s1768_s12, 4  ;;  %s1420_s24 = int_to_ptr.vmem [resolvable:$true] %s1419_s24 }
 0x72f   :  { %1500 = vmatmul.msk.f32.gmra.mxu3 %vm1365_vm3, %v1350_v11 }
 0x74f   :  { %v1267_v12 = vpop.f32.mrf.mxu2 }
 0x750   :  { %v1268_v54 = vadd.f32 %v1568_v4, %v1267_v12 }
 0x752   :  { %v1497_v13 = vmul.f32 -1.442695, %v1268_v54 }
 0x754   :  { %1660 = vpow2.f32 %v1497_v13 }
 0x757   :  { %v1270_v16 = vpop.f32.mrf.mxu2 }
 0x758   :  { %v1271_v17 = vadd.f32 %v1568_v4, %v1270_v16 }
 0x75a   :  { %v1661_v21 = vpop.eup %1660  ;;  %v1498_v22 = vmul.f32 -1.442695, %v1271_v17 }
 0x75b   :  { %v1287_v57 = vadd.f32 1.0, %v1661_v21 }
 0x75c   :  { %1662 = vpow2.f32 %v1498_v22 }
 0x75d   :  { %1664 = vrcp.f32 %v1287_v57  ;;  %v1330_v25 = vand.u32 2147483648, %v1287_v57  ;;  %v1328_v27 = vand.u32 2147483647, %v1287_v57  ;;  %vm1324_vm9 = vweird.f32 %v1287_v57 }
 0x75f   :  { %v1331_v43 = vor.u32 1.1754944e-38, %v1330_v25  ;;  %vm1329_vm11 = vcmp.eq.f32.partialorder %v1328_v27, 8.507059e+37 }
 0x762   :  { %v1663_v39 = vpop.eup %1662 }
 0x763   :  { %v1665_v0 = vpop.eup %1664  ;;  %v1288_v62 = vadd.f32 1.0, %v1663_v39 }
 0x764   :  { %v1320_v23 = vmul.f32 %v1665_v0, %v1287_v57  ;;  %vm1325_vm8 = vweird.f32 %v1665_v0 }
 0x765   :  { %1666 = vrcp.f32 %v1288_v62  ;;  %vm1326_vm10 = vmor %vm1324_vm9, %vm1325_vm8  ;;  %v1345_v35 = vand.u32 2147483648, %v1288_v62  ;;  %v1343_v40 = vand.u32 2147483647, %v1288_v62  ;;  %vm1339_vm13 = vweird.f32 %v1288_v62 }
 0x766   :  { %v1321_v14 = vsub.f32 1.0, %v1320_v23 }
 0x767   :  { %v1346_v38 = vor.u32 1.1754944e-38, %v1345_v35  ;;  %vm1344_vm15 = vcmp.eq.f32.partialorder %v1343_v40, 8.507059e+37 }
 0x768   :  { %v1322_v26 = vmul.f32 %v1665_v0, %v1321_v14 }
 0x76a   :  { %v1323_v28 = vadd.f32 %v1665_v0, %v1322_v26 }
 0x76b   :  { %v1667_v19 = vpop.eup %1666 }
 0x76c   :  { %v1327_v1 = vsel %vm1326_vm10, %v1665_v0, %v1323_v28  ;;  %v1335_v15 = vmul.f32 %v1667_v19, %v1288_v62  ;;  %vm1340_vm12 = vweird.f32 %v1667_v19 }
 0x76d   :  { %v1332_v32 = vsel %vm1329_vm11, %v1331_v43, %v1327_v1  ;;  %vm1341_vm14 = vmor %vm1339_vm13, %vm1340_vm12 }
 0x76e   :  { %v1351_v31 = vmul.f32 %v1332_v32, %v1268_v54  ;;  %v1336_v24 = vsub.f32 1.0, %v1335_v15 }
 0x770   :  { %v1337_v4 = vmul.f32 %v1667_v19, %v1336_v24  ;;  %1501 = vmatmul.msk.f32.gmra.mxu3 %vm1365_vm3, %v1351_v31 }
 0x772   :  { %v1338_v37 = vadd.f32 %v1667_v19, %v1337_v4 }
 0x774   :  { %v1342_v30 = vsel %vm1341_vm14, %v1667_v19, %v1338_v37 }
 0x775   :  { %v1347_v44 = vsel %vm1344_vm15, %v1346_v38, %v1342_v30 }
 0x776   :  { %v1352_v46 = vmul.f32 %v1347_v44, %v1271_v17 }
 0x778   :  { %1502 = vmatmul.msk.f32.gmra.mxu3 %vm1365_vm3, %v1352_v46 }
 0x7aa   :  { %v1395_v36 = vpop.f32.mrf.mxu3 }
 0x7ab   :  { %v1396_v49 = vadd.f32 %v1569_v48, %v1395_v36 }
 0x7ad   :  { %v1407_v50 = vadd.f32 %v1396_v49, %v2177_v59 }
 0x7af   :  { %1411 = vst.msk [vmem:[#allocation7] sm:$0xff] %vm79_vm0, %v1407_v50 }
 0x7b2   :  { %v1398_v34 = vpop.f32.mrf.mxu3 }
 0x7b3   :  { %v1399_v52 = vadd.f32 %v1569_v48, %v1398_v34 }
 0x7b5   :  { %v1408_v53 = vadd.f32 %v1399_v52, %v2184_v58 }
 0x7b7   :  { %1412 = vst.msk [vmem:[#allocation7 + $0x8] sm:$0xff] %vm79_vm0, %v1408_v53 }
 0x7f3   :  { %v1401_v45 = vpop.f32.mrf.mxu3 }
 0x7f4   :  { %v1402_v18 = vadd.f32 %v1569_v48, %v1401_v45 }
 0x7f6   :  { %v1409_v42 = vadd.f32 %v1402_v18, %v2191_v6 }
 0x7f8   :  { %1413 = vst.msk [vmem:[#allocation7 + $0x10] sm:$0xff] %vm79_vm0, %v1409_v42 }
 0x7fb   :  { %v1404_v33 = vpop.f32.mrf.mxu3 }
 0x7fc   :  { %v1405_v59 = vadd.f32 %v1569_v48, %v1404_v33 }
 0x7fe   :  { %v1410_v55 = vadd.f32 %v1405_v59, %v2198_v10 }
 0x800   :  { %1414 = vst.msk [vmem:[#allocation7 + $0x18] sm:$0xff] %vm79_vm0, %v1410_v55 }
 0x801   :  { %1427 = dma.vmem_to_hbm [thread:$0]  %s1420_s24, 512, %s1422_s0, [#allocation4], %s1752_s18, %s1752_s18, %s1753_s19  }
 0x802   :  { %1748 = dma.done.wait [#allocation4], 512  }
 0x803   :  { %1749 = vsyncadd [#allocation4], 4294966784 }
 0x804   :  { %1432 = vsyncpa [#allocation3], 1 }
 0x805   :  { %1433 = vsyncpa [#allocation6], 1 }
 0x806   :  { %1434 = vsyncpa [#allocation4], 1 }

</bundles_post_ra>
